<compile_context>
chip_gen: v7x
topology: tpu7x:2x2x1
jax: 0.10.0
libtpu: 0.0.40
codegen_flags: <defaults>
</compile_context>

<pallas_src>
import jax
import jax.numpy as jnp
from jax.experimental import pallas as pl
from jax.experimental.pallas import tpu as pltpu


def _lstm_attn_kernel(x_ref, wih_ref, whh_ref, b_ref, wcls_ref, bcls_ref,
                      out_ref):
    # x_ref:    (T, Bt, I)   time-major batch tile (MXU dtype)
    # wih_ref:  (I, 4H)      input->gate weights (gate order i, f, g, o)
    # whh_ref:  (H, 4H)      hidden->gate weights (float32, recurrent path)
    # b_ref:    (1, 4H)      combined bias b_ih + b_hh (float32)
    # wcls_ref: (H, C)       classifier weights (MXU dtype)
    # bcls_ref: (1, C)       classifier bias (float32)
    # out_ref:  (Bt, SLAB)   lane-dense packed output: [logits | attn | pad]
    T, Bt, I = x_ref.shape
    H = whh_ref.shape[0]
    C = wcls_ref.shape[1]

    wih = wih_ref[...]
    whh = whh_ref[...]
    bias = b_ref[...]

    # ---- hoisted input projection: one big MXU matmul for all T steps ----
    x2 = x_ref[...].reshape(T * Bt, I)
    pre_all = jnp.dot(x2, wih,
                      preferred_element_type=jnp.float32) + bias   # (T*Bt, 4H)

    h = jnp.zeros((Bt, H), jnp.float32)
    c = jnp.zeros((Bt, H), jnp.float32)
    hs = []

    # ---- fully unrolled recurrence: only h @ W_hh on the serial path ----
    for t in range(T):
        pre = (pre_all[t * Bt:(t + 1) * Bt, :]
               + jnp.dot(h, whh, preferred_element_type=jnp.float32))  # (Bt, 4H)
        sig = jax.nn.sigmoid(pre)                  # one EUP pass covers i, f, o
        i_g = sig[:, 0:H]
        f_g = sig[:, H:2 * H]
        o_g = sig[:, 3 * H:4 * H]
        g_g = jnp.tanh(pre[:, 2 * H:3 * H])        # tanh only on the g block
        c = f_g * c + i_g * g_g
        h = o_g * jnp.tanh(c)
        hs.append(h)

    h_final = h                                                     # (Bt, H)

    # ---- dot attention: 1 stacked multiply + 1 lane reduce + 1 tiny transpose
    hs_stack = jnp.stack(hs, axis=0)                                # (T, Bt, H)
    scores = jnp.sum(hs_stack * h_final[None, :, :], axis=-1).T     # (Bt, T)
    m = jnp.max(scores, axis=-1, keepdims=True)
    e = jnp.exp(scores - m)
    w = e / jnp.sum(e, axis=-1, keepdims=True)                      # softmax over T

    context = jnp.zeros((Bt, H), jnp.float32)
    for t in range(T):
        context = context + w[:, t:t + 1] * hs[t]                   # (Bt, H)

    logits = (jnp.dot(context.astype(wcls_ref.dtype), wcls_ref[...],
                      preferred_element_type=jnp.float32)
              + bcls_ref[...])                                       # (Bt, C)

    # ---- lane-dense packed output slab: single unmasked store ----
    pad_w = out_ref.shape[1] - C - T
    pieces = [logits, w]
    if pad_w > 0:
        pieces.append(jnp.zeros((Bt, pad_w), jnp.float32))
    out_ref[...] = jnp.concatenate(pieces, axis=1).astype(out_ref.dtype)


def lstm_attn_classifier(x, params, return_attn_weights=False,
                         matmul_dtype=jnp.bfloat16, batch_tile=None):
    """x: (B, inp_size, T) float32; params: dict of PyTorch-layout weights.

    matmul_dtype only affects the two off-recurrence matmuls (input
    projection + classifier); the recurrence / gate / softmax math is f32.
    """
    B, I, T = x.shape
    w_ih = jnp.asarray(params["w_ih"], jnp.float32)    # (4H, I)
    w_hh = jnp.asarray(params["w_hh"], jnp.float32)    # (4H, H)
    b_ih = jnp.asarray(params["b_ih"], jnp.float32)    # (4H,)
    b_hh = jnp.asarray(params["b_hh"], jnp.float32)    # (4H,)
    w_cls = jnp.asarray(params["w_cls"], jnp.float32)  # (C, H)
    b_cls = jnp.asarray(params["b_cls"], jnp.float32)  # (C,)
    H = w_hh.shape[1]
    C = w_cls.shape[0]

    mm_dtype = jnp.dtype(matmul_dtype)
    if batch_tile is None:
        batch_tile = 8 * max(1, 4 // mm_dtype.itemsize)  # 8 for f32, 16 for bf16
    Bt = int(batch_tile)
    Bp = ((B + Bt - 1) // Bt) * Bt
    nb = Bp // Bt

    # Time-major, batch-padded input; MXU operands cast to matmul_dtype.
    x_tbi = jnp.transpose(x, (2, 0, 1))                              # (T, B, I)
    x_tbi = jnp.pad(x_tbi, ((0, 0), (0, Bp - B), (0, 0)))            # (T, Bp, I)
    x_tbi = x_tbi.astype(mm_dtype)

    wih_t = w_ih.T.astype(mm_dtype)                                  # (I, 4H)
    whh_t = w_hh.T                                                   # (H, 4H) f32
    b = (b_ih + b_hh).reshape(1, 4 * H)                              # (1, 4H)
    wcls_t = w_cls.T.astype(mm_dtype)                                # (H, C)
    bcls = b_cls.reshape(1, C)                                       # (1, C)

    slab_w = max(128, ((C + T + 127) // 128) * 128)

    isz = mm_dtype.itemsize
    flops = (2 * T * Bp * I * 4 * H          # hoisted input projection
             + 2 * T * Bp * H * 4 * H        # recurrence h @ W_hh
             + 2 * Bp * H * C                # classifier
             + 10 * T * Bp * H)              # gate / state / attention VPU work
    transcendentals = T * Bp * 6 * H + Bp * T
    bytes_accessed = (T * Bp * I * isz + I * 4 * H * isz
                      + H * 4 * H * 4 + 4 * H * 4
                      + H * C * isz + C * 4
                      + Bp * slab_w * 4)

    slab = pl.pallas_call(
        _lstm_attn_kernel,
        out_shape=jax.ShapeDtypeStruct((Bp, slab_w), jnp.float32),
        grid=(nb,),
        in_specs=[
            pl.BlockSpec((T, Bt, I), lambda i: (0, i, 0)),
            pl.BlockSpec((I, 4 * H), lambda i: (0, 0)),
            pl.BlockSpec((H, 4 * H), lambda i: (0, 0)),
            pl.BlockSpec((1, 4 * H), lambda i: (0, 0)),
            pl.BlockSpec((H, C), lambda i: (0, 0)),
            pl.BlockSpec((1, C), lambda i: (0, 0)),
        ],
        out_specs=pl.BlockSpec((Bt, slab_w), lambda i: (i, 0)),
        compiler_params=pltpu.CompilerParams(
            dimension_semantics=("parallel",)),
        cost_estimate=pl.CostEstimate(
            flops=int(flops),
            transcendentals=int(transcendentals),
            bytes_accessed=int(bytes_accessed)),
    )(x_tbi, wih_t, whh_t, b, wcls_t, bcls)

    logits = slab[:B, :C]
    if return_attn_weights:
        return logits, slab[:B, C:C + T]
    return logits


def _reference(x, params):
    """Pure-JAX reference mirroring the PyTorch forward (for validation)."""
    B, I, T = x.shape
    w_ih = params["w_ih"]; w_hh = params["w_hh"]
    b_ih = params["b_ih"]; b_hh = params["b_hh"]
    w_cls = params["w_cls"]; b_cls = params["b_cls"]
    H = w_hh.shape[1]
    xs = jnp.transpose(x, (0, 2, 1))                              # (B, T, I)
    h = jnp.zeros((B, H), jnp.float32)
    c = jnp.zeros((B, H), jnp.float32)
    outs = []
    for t in range(T):
        pre = xs[:, t, :] @ w_ih.T + h @ w_hh.T + b_ih + b_hh
        i_g = jax.nn.sigmoid(pre[:, 0:H])
        f_g = jax.nn.sigmoid(pre[:, H:2 * H])
        g_g = jnp.tanh(pre[:, 2 * H:3 * H])
        o_g = jax.nn.sigmoid(pre[:, 3 * H:4 * H])
        c = f_g * c + i_g * g_g
        h = o_g * jnp.tanh(c)
        outs.append(h)
    lstm_out = jnp.stack(outs, axis=1)                            # (B, T, H)
    scores = jnp.einsum("bth,bh->bt", lstm_out, h)                # (B, T)
    w = jax.nn.softmax(scores, axis=1)
    context = jnp.einsum("bt,bth->bh", w, lstm_out)               # (B, H)
    return context @ w_cls.T + b_cls, w


if __name__ == "__main__":
    B, inp_size, T = 2, 16, 8
    hidden_size, n_classes = 32, 4

    key = jax.random.PRNGKey(0)
    ks = jax.random.split(key, 8)
    k_lstm = 1.0 / jnp.sqrt(hidden_size)
    k_lin = 1.0 / jnp.sqrt(hidden_size)

    params = {
        "w_ih": jax.random.uniform(ks[0], (4 * hidden_size, inp_size),
                                   jnp.float32, -k_lstm, k_lstm),
        "w_hh": jax.random.uniform(ks[1], (4 * hidden_size, hidden_size),
                                   jnp.float32, -k_lstm, k_lstm),
        "b_ih": jax.random.uniform(ks[2], (4 * hidden_size,),
                                   jnp.float32, -k_lstm, k_lstm),
        "b_hh": jax.random.uniform(ks[3], (4 * hidden_size,),
                                   jnp.float32, -k_lstm, k_lstm),
        "w_cls": jax.random.uniform(ks[4], (n_classes, hidden_size),
                                    jnp.float32, -k_lin, k_lin),
        "b_cls": jax.random.uniform(ks[5], (n_classes,),
                                    jnp.float32, -k_lin, k_lin),
    }
    x = jax.random.normal(ks[6], (B, inp_size, T), jnp.float32)

    # Default path (bf16 MXU operands off the recurrent path).
    out_bf = lstm_attn_classifier(x, params)
    out_bf = jax.block_until_ready(out_bf)
    out_bf2, attn_bf = lstm_attn_classifier(x, params, return_attn_weights=True)
    out_bf2, attn_bf = jax.block_until_ready((out_bf2, attn_bf))

    # Full-f32 path for strict numerical validation against the reference.
    out_f32, attn_f32 = lstm_attn_classifier(
        x, params, return_attn_weights=True, matmul_dtype=jnp.float32)
    out_f32, attn_f32 = jax.block_until_ready((out_f32, attn_f32))

    ref_out, ref_attn = _reference(x, params)

    assert out_bf.shape == (B, n_classes)
    assert out_bf2.shape == (B, n_classes)
    assert attn_bf.shape == (B, T)
    assert jnp.allclose(out_f32, ref_out, atol=1e-4, rtol=1e-4), (out_f32, ref_out)
    assert jnp.allclose(attn_f32, ref_attn, atol=1e-4, rtol=1e-4), (attn_f32, ref_attn)
    # bf16 MXU operands on the non-recurrent matmuls: looser tolerance.
    assert jnp.allclose(out_bf, ref_out, atol=5e-2, rtol=5e-2), (out_bf, ref_out)
    assert jnp.allclose(out_bf2, ref_out, atol=5e-2, rtol=5e-2), (out_bf2, ref_out)
    assert jnp.allclose(attn_bf, ref_attn, atol=5e-2, rtol=5e-2), (attn_bf, ref_attn)

    print("KERNEL_OK")
</pallas_src>

<mosaic_0001>
module attributes {stable_mosaic.version = 11 : i64} {
  func.func @_lstm_attn_kernel(%arg0: i32, %arg1: memref<8x16x16xbf16, #tpu.memory_space<vmem>>, %arg2: memref<16x128xbf16, #tpu.memory_space<vmem>>, %arg3: memref<32x128xf32, #tpu.memory_space<vmem>>, %arg4: memref<1x128xf32, #tpu.memory_space<vmem>>, %arg5: memref<32x4xbf16, #tpu.memory_space<vmem>>, %arg6: memref<1x4xf32, #tpu.memory_space<vmem>>, %arg7: memref<16x128xf32, #tpu.memory_space<vmem>>) attributes {dimension_semantics = [#tpu.dimension_semantics<parallel>], iteration_bounds = array<i64: 1>, scalar_prefetch = 0 : i64, scratch_operands = 0 : i64, tpu.core_type = #tpu.core_type<tc>, window_params = [{transform_indices = @transform_0, window_bounds = array<i64: 8, 16, 16>}, {pipeline_mode = #tpu.pipeline_mode<synchronous>, transform_indices = @transform_1, window_bounds = array<i64: 16, 128>}, {pipeline_mode = #tpu.pipeline_mode<synchronous>, transform_indices = @transform_2, window_bounds = array<i64: 32, 128>}, {pipeline_mode = #tpu.pipeline_mode<synchronous>, transform_indices = @transform_3, window_bounds = array<i64: 1, 128>}, {pipeline_mode = #tpu.pipeline_mode<synchronous>, transform_indices = @transform_4, window_bounds = array<i64: 32, 4>}, {pipeline_mode = #tpu.pipeline_mode<synchronous>, transform_indices = @transform_5, window_bounds = array<i64: 1, 4>}, {transform_indices = @transform_6, window_bounds = array<i64: 16, 128>}]} {
    %c0 = arith.constant 0 : index
    %c0_0 = arith.constant 0 : index
    %0 = vector.load %arg2[%c0, %c0_0] : memref<16x128xbf16, #tpu.memory_space<vmem>>, vector<16x128xbf16>
    %c0_1 = arith.constant 0 : index
    %c0_2 = arith.constant 0 : index
    %1 = vector.load %arg3[%c0_1, %c0_2] : memref<32x128xf32, #tpu.memory_space<vmem>>, vector<32x128xf32>
    %c0_3 = arith.constant 0 : index
    %c0_4 = arith.constant 0 : index
    %2 = vector.load %arg4[%c0_3, %c0_4] : memref<1x128xf32, #tpu.memory_space<vmem>>, vector<1x128xf32>
    %c0_5 = arith.constant 0 : index
    %c0_6 = arith.constant 0 : index
    %c0_7 = arith.constant 0 : index
    %3 = vector.load %arg1[%c0_5, %c0_6, %c0_7] : memref<8x16x16xbf16, #tpu.memory_space<vmem>>, vector<8x16x16xbf16>
    %4 = vector.shape_cast %3 : vector<8x16x16xbf16> to vector<128x16xbf16>
    %cst = arith.constant dense<0.000000e+00> : vector<128x128xf32>
    %5 = tpu.matmul %4, %0, %cst {dimension_numbers = #tpu.dot_dimension_numbers<[1], [0], [0], [1], [0, 0, 1, 1], [], []>} : vector<128x16xbf16>, vector<16x128xbf16>, vector<128x128xf32> -> vector<128x128xf32>
    %6 = vector.broadcast %2 : vector<1x128xf32> to vector<128x128xf32>
    %7 = arith.addf %5, %6 : vector<128x128xf32>
    %cst_8 = arith.constant 0.000000e+00 : f32
    %8 = vector.broadcast %cst_8 : f32 to vector<16x32xf32>
    %cst_9 = arith.constant 0.000000e+00 : f32
    %9 = vector.broadcast %cst_9 : f32 to vector<16x32xf32>
    %10 = vector.extract_strided_slice %7 {offsets = [0, 0], sizes = [16, 128], strides = [1, 1]} : vector<128x128xf32> to vector<16x128xf32>
    %cst_10 = arith.constant dense<0.000000e+00> : vector<16x128xf32>
    %11 = tpu.matmul %8, %1, %cst_10 {dimension_numbers = #tpu.dot_dimension_numbers<[1], [0], [0], [1], [0, 0, 1, 1], [], []>} : vector<16x32xf32>, vector<32x128xf32>, vector<16x128xf32> -> vector<16x128xf32>
    %12 = arith.addf %10, %11 : vector<16x128xf32>
    %13 = arith.negf %12 : vector<16x128xf32>
    %14 = math.exp %13 : vector<16x128xf32>
    %cst_11 = arith.constant 1.000000e+00 : f32
    %15 = vector.broadcast %cst_11 : f32 to vector<16x128xf32>
    %16 = arith.addf %15, %14 : vector<16x128xf32>
    %17 = arith.divf %15, %16 : vector<16x128xf32>
    %18 = vector.extract_strided_slice %17 {offsets = [0, 0], sizes = [16, 32], strides = [1, 1]} : vector<16x128xf32> to vector<16x32xf32>
    %19 = vector.extract_strided_slice %17 {offsets = [0, 32], sizes = [16, 32], strides = [1, 1]} : vector<16x128xf32> to vector<16x32xf32>
    %20 = vector.extract_strided_slice %17 {offsets = [0, 96], sizes = [16, 32], strides = [1, 1]} : vector<16x128xf32> to vector<16x32xf32>
    %21 = vector.extract_strided_slice %12 {offsets = [0, 64], sizes = [16, 32], strides = [1, 1]} : vector<16x128xf32> to vector<16x32xf32>
    %22 = math.tanh %21 : vector<16x32xf32>
    %23 = arith.mulf %19, %9 : vector<16x32xf32>
    %24 = arith.mulf %18, %22 : vector<16x32xf32>
    %25 = arith.addf %23, %24 : vector<16x32xf32>
    %26 = math.tanh %25 : vector<16x32xf32>
    %27 = arith.mulf %20, %26 : vector<16x32xf32>
    %28 = vector.extract_strided_slice %7 {offsets = [16, 0], sizes = [16, 128], strides = [1, 1]} : vector<128x128xf32> to vector<16x128xf32>
    %cst_12 = arith.constant dense<0.000000e+00> : vector<16x128xf32>
    %29 = tpu.matmul %27, %1, %cst_12 {dimension_numbers = #tpu.dot_dimension_numbers<[1], [0], [0], [1], [0, 0, 1, 1], [], []>} : vector<16x32xf32>, vector<32x128xf32>, vector<16x128xf32> -> vector<16x128xf32>
    %30 = arith.addf %28, %29 : vector<16x128xf32>
    %31 = arith.negf %30 : vector<16x128xf32>
    %32 = math.exp %31 : vector<16x128xf32>
    %cst_13 = arith.constant 1.000000e+00 : f32
    %33 = vector.broadcast %cst_13 : f32 to vector<16x128xf32>
    %34 = arith.addf %33, %32 : vector<16x128xf32>
    %35 = arith.divf %33, %34 : vector<16x128xf32>
    %36 = vector.extract_strided_slice %35 {offsets = [0, 0], sizes = [16, 32], strides = [1, 1]} : vector<16x128xf32> to vector<16x32xf32>
    %37 = vector.extract_strided_slice %35 {offsets = [0, 32], sizes = [16, 32], strides = [1, 1]} : vector<16x128xf32> to vector<16x32xf32>
    %38 = vector.extract_strided_slice %35 {offsets = [0, 96], sizes = [16, 32], strides = [1, 1]} : vector<16x128xf32> to vector<16x32xf32>
    %39 = vector.extract_strided_slice %30 {offsets = [0, 64], sizes = [16, 32], strides = [1, 1]} : vector<16x128xf32> to vector<16x32xf32>
    %40 = math.tanh %39 : vector<16x32xf32>
    %41 = arith.mulf %37, %25 : vector<16x32xf32>
    %42 = arith.mulf %36, %40 : vector<16x32xf32>
    %43 = arith.addf %41, %42 : vector<16x32xf32>
    %44 = math.tanh %43 : vector<16x32xf32>
    %45 = arith.mulf %38, %44 : vector<16x32xf32>
    %46 = vector.extract_strided_slice %7 {offsets = [32, 0], sizes = [16, 128], strides = [1, 1]} : vector<128x128xf32> to vector<16x128xf32>
    %cst_14 = arith.constant dense<0.000000e+00> : vector<16x128xf32>
    %47 = tpu.matmul %45, %1, %cst_14 {dimension_numbers = #tpu.dot_dimension_numbers<[1], [0], [0], [1], [0, 0, 1, 1], [], []>} : vector<16x32xf32>, vector<32x128xf32>, vector<16x128xf32> -> vector<16x128xf32>
    %48 = arith.addf %46, %47 : vector<16x128xf32>
    %49 = arith.negf %48 : vector<16x128xf32>
    %50 = math.exp %49 : vector<16x128xf32>
    %cst_15 = arith.constant 1.000000e+00 : f32
    %51 = vector.broadcast %cst_15 : f32 to vector<16x128xf32>
    %52 = arith.addf %51, %50 : vector<16x128xf32>
    %53 = arith.divf %51, %52 : vector<16x128xf32>
    %54 = vector.extract_strided_slice %53 {offsets = [0, 0], sizes = [16, 32], strides = [1, 1]} : vector<16x128xf32> to vector<16x32xf32>
    %55 = vector.extract_strided_slice %53 {offsets = [0, 32], sizes = [16, 32], strides = [1, 1]} : vector<16x128xf32> to vector<16x32xf32>
    %56 = vector.extract_strided_slice %53 {offsets = [0, 96], sizes = [16, 32], strides = [1, 1]} : vector<16x128xf32> to vector<16x32xf32>
    %57 = vector.extract_strided_slice %48 {offsets = [0, 64], sizes = [16, 32], strides = [1, 1]} : vector<16x128xf32> to vector<16x32xf32>
    %58 = math.tanh %57 : vector<16x32xf32>
    %59 = arith.mulf %55, %43 : vector<16x32xf32>
    %60 = arith.mulf %54, %58 : vector<16x32xf32>
    %61 = arith.addf %59, %60 : vector<16x32xf32>
    %62 = math.tanh %61 : vector<16x32xf32>
    %63 = arith.mulf %56, %62 : vector<16x32xf32>
    %64 = vector.extract_strided_slice %7 {offsets = [48, 0], sizes = [16, 128], strides = [1, 1]} : vector<128x128xf32> to vector<16x128xf32>
    %cst_16 = arith.constant dense<0.000000e+00> : vector<16x128xf32>
    %65 = tpu.matmul %63, %1, %cst_16 {dimension_numbers = #tpu.dot_dimension_numbers<[1], [0], [0], [1], [0, 0, 1, 1], [], []>} : vector<16x32xf32>, vector<32x128xf32>, vector<16x128xf32> -> vector<16x128xf32>
    %66 = arith.addf %64, %65 : vector<16x128xf32>
    %67 = arith.negf %66 : vector<16x128xf32>
    %68 = math.exp %67 : vector<16x128xf32>
    %cst_17 = arith.constant 1.000000e+00 : f32
    %69 = vector.broadcast %cst_17 : f32 to vector<16x128xf32>
    %70 = arith.addf %69, %68 : vector<16x128xf32>
    %71 = arith.divf %69, %70 : vector<16x128xf32>
    %72 = vector.extract_strided_slice %71 {offsets = [0, 0], sizes = [16, 32], strides = [1, 1]} : vector<16x128xf32> to vector<16x32xf32>
    %73 = vector.extract_strided_slice %71 {offsets = [0, 32], sizes = [16, 32], strides = [1, 1]} : vector<16x128xf32> to vector<16x32xf32>
    %74 = vector.extract_strided_slice %71 {offsets = [0, 96], sizes = [16, 32], strides = [1, 1]} : vector<16x128xf32> to vector<16x32xf32>
    %75 = vector.extract_strided_slice %66 {offsets = [0, 64], sizes = [16, 32], strides = [1, 1]} : vector<16x128xf32> to vector<16x32xf32>
    %76 = math.tanh %75 : vector<16x32xf32>
    %77 = arith.mulf %73, %61 : vector<16x32xf32>
    %78 = arith.mulf %72, %76 : vector<16x32xf32>
    %79 = arith.addf %77, %78 : vector<16x32xf32>
    %80 = math.tanh %79 : vector<16x32xf32>
    %81 = arith.mulf %74, %80 : vector<16x32xf32>
    %82 = vector.extract_strided_slice %7 {offsets = [64, 0], sizes = [16, 128], strides = [1, 1]} : vector<128x128xf32> to vector<16x128xf32>
    %cst_18 = arith.constant dense<0.000000e+00> : vector<16x128xf32>
    %83 = tpu.matmul %81, %1, %cst_18 {dimension_numbers = #tpu.dot_dimension_numbers<[1], [0], [0], [1], [0, 0, 1, 1], [], []>} : vector<16x32xf32>, vector<32x128xf32>, vector<16x128xf32> -> vector<16x128xf32>
    %84 = arith.addf %82, %83 : vector<16x128xf32>
    %85 = arith.negf %84 : vector<16x128xf32>
    %86 = math.exp %85 : vector<16x128xf32>
    %cst_19 = arith.constant 1.000000e+00 : f32
    %87 = vector.broadcast %cst_19 : f32 to vector<16x128xf32>
    %88 = arith.addf %87, %86 : vector<16x128xf32>
    %89 = arith.divf %87, %88 : vector<16x128xf32>
    %90 = vector.extract_strided_slice %89 {offsets = [0, 0], sizes = [16, 32], strides = [1, 1]} : vector<16x128xf32> to vector<16x32xf32>
    %91 = vector.extract_strided_slice %89 {offsets = [0, 32], sizes = [16, 32], strides = [1, 1]} : vector<16x128xf32> to vector<16x32xf32>
    %92 = vector.extract_strided_slice %89 {offsets = [0, 96], sizes = [16, 32], strides = [1, 1]} : vector<16x128xf32> to vector<16x32xf32>
    %93 = vector.extract_strided_slice %84 {offsets = [0, 64], sizes = [16, 32], strides = [1, 1]} : vector<16x128xf32> to vector<16x32xf32>
    %94 = math.tanh %93 : vector<16x32xf32>
    %95 = arith.mulf %91, %79 : vector<16x32xf32>
    %96 = arith.mulf %90, %94 : vector<16x32xf32>
    %97 = arith.addf %95, %96 : vector<16x32xf32>
    %98 = math.tanh %97 : vector<16x32xf32>
    %99 = arith.mulf %92, %98 : vector<16x32xf32>
    %100 = vector.extract_strided_slice %7 {offsets = [80, 0], sizes = [16, 128], strides = [1, 1]} : vector<128x128xf32> to vector<16x128xf32>
    %cst_20 = arith.constant dense<0.000000e+00> : vector<16x128xf32>
    %101 = tpu.matmul %99, %1, %cst_20 {dimension_numbers = #tpu.dot_dimension_numbers<[1], [0], [0], [1], [0, 0, 1, 1], [], []>} : vector<16x32xf32>, vector<32x128xf32>, vector<16x128xf32> -> vector<16x128xf32>
    %102 = arith.addf %100, %101 : vector<16x128xf32>
    %103 = arith.negf %102 : vector<16x128xf32>
    %104 = math.exp %103 : vector<16x128xf32>
    %cst_21 = arith.constant 1.000000e+00 : f32
    %105 = vector.broadcast %cst_21 : f32 to vector<16x128xf32>
    %106 = arith.addf %105, %104 : vector<16x128xf32>
    %107 = arith.divf %105, %106 : vector<16x128xf32>
    %108 = vector.extract_strided_slice %107 {offsets = [0, 0], sizes = [16, 32], strides = [1, 1]} : vector<16x128xf32> to vector<16x32xf32>
    %109 = vector.extract_strided_slice %107 {offsets = [0, 32], sizes = [16, 32], strides = [1, 1]} : vector<16x128xf32> to vector<16x32xf32>
    %110 = vector.extract_strided_slice %107 {offsets = [0, 96], sizes = [16, 32], strides = [1, 1]} : vector<16x128xf32> to vector<16x32xf32>
    %111 = vector.extract_strided_slice %102 {offsets = [0, 64], sizes = [16, 32], strides = [1, 1]} : vector<16x128xf32> to vector<16x32xf32>
    %112 = math.tanh %111 : vector<16x32xf32>
    %113 = arith.mulf %109, %97 : vector<16x32xf32>
    %114 = arith.mulf %108, %112 : vector<16x32xf32>
    %115 = arith.addf %113, %114 : vector<16x32xf32>
    %116 = math.tanh %115 : vector<16x32xf32>
    %117 = arith.mulf %110, %116 : vector<16x32xf32>
    %118 = vector.extract_strided_slice %7 {offsets = [96, 0], sizes = [16, 128], strides = [1, 1]} : vector<128x128xf32> to vector<16x128xf32>
    %cst_22 = arith.constant dense<0.000000e+00> : vector<16x128xf32>
    %119 = tpu.matmul %117, %1, %cst_22 {dimension_numbers = #tpu.dot_dimension_numbers<[1], [0], [0], [1], [0, 0, 1, 1], [], []>} : vector<16x32xf32>, vector<32x128xf32>, vector<16x128xf32> -> vector<16x128xf32>
    %120 = arith.addf %118, %119 : vector<16x128xf32>
    %121 = arith.negf %120 : vector<16x128xf32>
    %122 = math.exp %121 : vector<16x128xf32>
    %cst_23 = arith.constant 1.000000e+00 : f32
    %123 = vector.broadcast %cst_23 : f32 to vector<16x128xf32>
    %124 = arith.addf %123, %122 : vector<16x128xf32>
    %125 = arith.divf %123, %124 : vector<16x128xf32>
    %126 = vector.extract_strided_slice %125 {offsets = [0, 0], sizes = [16, 32], strides = [1, 1]} : vector<16x128xf32> to vector<16x32xf32>
    %127 = vector.extract_strided_slice %125 {offsets = [0, 32], sizes = [16, 32], strides = [1, 1]} : vector<16x128xf32> to vector<16x32xf32>
    %128 = vector.extract_strided_slice %125 {offsets = [0, 96], sizes = [16, 32], strides = [1, 1]} : vector<16x128xf32> to vector<16x32xf32>
    %129 = vector.extract_strided_slice %120 {offsets = [0, 64], sizes = [16, 32], strides = [1, 1]} : vector<16x128xf32> to vector<16x32xf32>
    %130 = math.tanh %129 : vector<16x32xf32>
    %131 = arith.mulf %127, %115 : vector<16x32xf32>
    %132 = arith.mulf %126, %130 : vector<16x32xf32>
    %133 = arith.addf %131, %132 : vector<16x32xf32>
    %134 = math.tanh %133 : vector<16x32xf32>
    %135 = arith.mulf %128, %134 : vector<16x32xf32>
    %136 = vector.extract_strided_slice %7 {offsets = [112, 0], sizes = [16, 128], strides = [1, 1]} : vector<128x128xf32> to vector<16x128xf32>
    %cst_24 = arith.constant dense<0.000000e+00> : vector<16x128xf32>
    %137 = tpu.matmul %135, %1, %cst_24 {dimension_numbers = #tpu.dot_dimension_numbers<[1], [0], [0], [1], [0, 0, 1, 1], [], []>} : vector<16x32xf32>, vector<32x128xf32>, vector<16x128xf32> -> vector<16x128xf32>
    %138 = arith.addf %136, %137 : vector<16x128xf32>
    %139 = arith.negf %138 : vector<16x128xf32>
    %140 = math.exp %139 : vector<16x128xf32>
    %cst_25 = arith.constant 1.000000e+00 : f32
    %141 = vector.broadcast %cst_25 : f32 to vector<16x128xf32>
    %142 = arith.addf %141, %140 : vector<16x128xf32>
    %143 = arith.divf %141, %142 : vector<16x128xf32>
    %144 = vector.extract_strided_slice %143 {offsets = [0, 0], sizes = [16, 32], strides = [1, 1]} : vector<16x128xf32> to vector<16x32xf32>
    %145 = vector.extract_strided_slice %143 {offsets = [0, 32], sizes = [16, 32], strides = [1, 1]} : vector<16x128xf32> to vector<16x32xf32>
    %146 = vector.extract_strided_slice %143 {offsets = [0, 96], sizes = [16, 32], strides = [1, 1]} : vector<16x128xf32> to vector<16x32xf32>
    %147 = vector.extract_strided_slice %138 {offsets = [0, 64], sizes = [16, 32], strides = [1, 1]} : vector<16x128xf32> to vector<16x32xf32>
    %148 = math.tanh %147 : vector<16x32xf32>
    %149 = arith.mulf %145, %133 : vector<16x32xf32>
    %150 = arith.mulf %144, %148 : vector<16x32xf32>
    %151 = arith.addf %149, %150 : vector<16x32xf32>
    %152 = math.tanh %151 : vector<16x32xf32>
    %153 = arith.mulf %146, %152 : vector<16x32xf32>
    %154 = vector.shape_cast %27 : vector<16x32xf32> to vector<1x16x32xf32>
    %155 = vector.shape_cast %45 : vector<16x32xf32> to vector<1x16x32xf32>
    %156 = vector.shape_cast %63 : vector<16x32xf32> to vector<1x16x32xf32>
    %157 = vector.shape_cast %81 : vector<16x32xf32> to vector<1x16x32xf32>
    %158 = vector.shape_cast %99 : vector<16x32xf32> to vector<1x16x32xf32>
    %159 = vector.shape_cast %117 : vector<16x32xf32> to vector<1x16x32xf32>
    %160 = vector.shape_cast %135 : vector<16x32xf32> to vector<1x16x32xf32>
    %161 = vector.shape_cast %153 : vector<16x32xf32> to vector<1x16x32xf32>
    %162 = tpu.concatenate %154, %155, %156, %157, %158, %159, %160, %161 in 0 : vector<1x16x32xf32>, vector<1x16x32xf32>, vector<1x16x32xf32>, vector<1x16x32xf32>, vector<1x16x32xf32>, vector<1x16x32xf32>, vector<1x16x32xf32>, vector<1x16x32xf32> -> vector<8x16x32xf32>
    %163 = vector.shape_cast %153 : vector<16x32xf32> to vector<1x16x32xf32>
    %164 = vector.broadcast %163 : vector<1x16x32xf32> to vector<8x16x32xf32>
    %165 = arith.mulf %162, %164 : vector<8x16x32xf32>
    %cst_26 = arith.constant dense<0.000000e+00> : vector<8x16xf32>
    %166 = vector.multi_reduction <add>, %165, %cst_26 [2] : vector<8x16x32xf32> to vector<8x16xf32>
    %167 = tpu.transpose %166, [1, 0] : vector<8x16xf32> -> vector<16x8xf32>
    %cst_27 = arith.constant dense<0xFF800000> : vector<16xf32>
    %168 = vector.multi_reduction <maximumf>, %167, %cst_27 [1] : vector<16x8xf32> to vector<16xf32>
    %169 = vector.shape_cast %168 : vector<16xf32> to vector<16x1xf32>
    %170 = vector.broadcast %169 : vector<16x1xf32> to vector<16x8xf32>
    %171 = arith.subf %167, %170 : vector<16x8xf32>
    %172 = math.exp %171 : vector<16x8xf32>
    %cst_28 = arith.constant dense<0.000000e+00> : vector<16xf32>
    %173 = vector.multi_reduction <add>, %172, %cst_28 [1] : vector<16x8xf32> to vector<16xf32>
    %174 = vector.shape_cast %173 : vector<16xf32> to vector<16x1xf32>
    %175 = vector.broadcast %174 : vector<16x1xf32> to vector<16x8xf32>
    %176 = arith.divf %172, %175 : vector<16x8xf32>
    %cst_29 = arith.constant 0.000000e+00 : f32
    %177 = vector.broadcast %cst_29 : f32 to vector<16x32xf32>
    %178 = vector.extract_strided_slice %176 {offsets = [0, 0], sizes = [16, 1], strides = [1, 1]} : vector<16x8xf32> to vector<16x1xf32>
    %179 = vector.broadcast %178 : vector<16x1xf32> to vector<16x32xf32>
    %180 = arith.mulf %179, %27 : vector<16x32xf32>
    %181 = arith.addf %177, %180 : vector<16x32xf32>
    %182 = vector.extract_strided_slice %176 {offsets = [0, 1], sizes = [16, 1], strides = [1, 1]} : vector<16x8xf32> to vector<16x1xf32>
    %183 = vector.broadcast %182 : vector<16x1xf32> to vector<16x32xf32>
    %184 = arith.mulf %183, %45 : vector<16x32xf32>
    %185 = arith.addf %181, %184 : vector<16x32xf32>
    %186 = vector.extract_strided_slice %176 {offsets = [0, 2], sizes = [16, 1], strides = [1, 1]} : vector<16x8xf32> to vector<16x1xf32>
    %187 = vector.broadcast %186 : vector<16x1xf32> to vector<16x32xf32>
    %188 = arith.mulf %187, %63 : vector<16x32xf32>
    %189 = arith.addf %185, %188 : vector<16x32xf32>
    %190 = vector.extract_strided_slice %176 {offsets = [0, 3], sizes = [16, 1], strides = [1, 1]} : vector<16x8xf32> to vector<16x1xf32>
    %191 = vector.broadcast %190 : vector<16x1xf32> to vector<16x32xf32>
    %192 = arith.mulf %191, %81 : vector<16x32xf32>
    %193 = arith.addf %189, %192 : vector<16x32xf32>
    %194 = vector.extract_strided_slice %176 {offsets = [0, 4], sizes = [16, 1], strides = [1, 1]} : vector<16x8xf32> to vector<16x1xf32>
    %195 = vector.broadcast %194 : vector<16x1xf32> to vector<16x32xf32>
    %196 = arith.mulf %195, %99 : vector<16x32xf32>
    %197 = arith.addf %193, %196 : vector<16x32xf32>
    %198 = vector.extract_strided_slice %176 {offsets = [0, 5], sizes = [16, 1], strides = [1, 1]} : vector<16x8xf32> to vector<16x1xf32>
    %199 = vector.broadcast %198 : vector<16x1xf32> to vector<16x32xf32>
    %200 = arith.mulf %199, %117 : vector<16x32xf32>
    %201 = arith.addf %197, %200 : vector<16x32xf32>
    %202 = vector.extract_strided_slice %176 {offsets = [0, 6], sizes = [16, 1], strides = [1, 1]} : vector<16x8xf32> to vector<16x1xf32>
    %203 = vector.broadcast %202 : vector<16x1xf32> to vector<16x32xf32>
    %204 = arith.mulf %203, %135 : vector<16x32xf32>
    %205 = arith.addf %201, %204 : vector<16x32xf32>
    %206 = vector.extract_strided_slice %176 {offsets = [0, 7], sizes = [16, 1], strides = [1, 1]} : vector<16x8xf32> to vector<16x1xf32>
    %207 = vector.broadcast %206 : vector<16x1xf32> to vector<16x32xf32>
    %208 = arith.mulf %207, %153 : vector<16x32xf32>
    %209 = arith.addf %205, %208 : vector<16x32xf32>
    %210 = arith.truncf %209 : vector<16x32xf32> to vector<16x32xbf16>
    %c0_30 = arith.constant 0 : index
    %c0_31 = arith.constant 0 : index
    %211 = vector.load %arg5[%c0_30, %c0_31] : memref<32x4xbf16, #tpu.memory_space<vmem>>, vector<32x4xbf16>
    %cst_32 = arith.constant dense<0.000000e+00> : vector<16x4xf32>
    %212 = tpu.matmul %210, %211, %cst_32 {dimension_numbers = #tpu.dot_dimension_numbers<[1], [0], [0], [1], [0, 0, 1, 1], [], []>} : vector<16x32xbf16>, vector<32x4xbf16>, vector<16x4xf32> -> vector<16x4xf32>
    %c0_33 = arith.constant 0 : index
    %c0_34 = arith.constant 0 : index
    %213 = vector.load %arg6[%c0_33, %c0_34] : memref<1x4xf32, #tpu.memory_space<vmem>>, vector<1x4xf32>
    %214 = vector.broadcast %213 : vector<1x4xf32> to vector<16x4xf32>
    %215 = arith.addf %212, %214 : vector<16x4xf32>
    %cst_35 = arith.constant 0.000000e+00 : f32
    %216 = vector.broadcast %cst_35 : f32 to vector<16x116xf32>
    %217 = tpu.concatenate %215, %176, %216 in 1 : vector<16x4xf32>, vector<16x8xf32>, vector<16x116xf32> -> vector<16x128xf32>
    %c0_36 = arith.constant 0 : index
    %c0_37 = arith.constant 0 : index
    %218 = vector.load %arg7[%c0_36, %c0_37] : memref<16x128xf32, #tpu.memory_space<vmem>>, vector<16x128xf32>
    tpu.vector_store %arg7[%c0_36, %c0_37], %217 {strides = array<i32>} : memref<16x128xf32, #tpu.memory_space<vmem>>, vector<16x128xf32>,
    return
  }
  func.func @transform_0(%arg0: i32) -> (i32, i32, i32) {
    %c0_i32 = arith.constant 0 : i32
    %c0_i32_0 = arith.constant 0 : i32
    %c0_i32_1 = arith.constant 0 : i32
    return %c0_i32, %arg0, %c0_i32_0 : i32, i32, i32
  }
  func.func @transform_1(%arg0: i32) -> (i32, i32) {
    %c0_i32 = arith.constant 0 : i32
    %c0_i32_0 = arith.constant 0 : i32
    %c0_i32_1 = arith.constant 0 : i32
    return %c0_i32, %c0_i32_0 : i32, i32
  }
  func.func @transform_2(%arg0: i32) -> (i32, i32) {
    %c0_i32 = arith.constant 0 : i32
    %c0_i32_0 = arith.constant 0 : i32
    %c0_i32_1 = arith.constant 0 : i32
    return %c0_i32, %c0_i32_0 : i32, i32
  }
  func.func @transform_3(%arg0: i32) -> (i32, i32) {
    %c0_i32 = arith.constant 0 : i32
    %c0_i32_0 = arith.constant 0 : i32
    %c0_i32_1 = arith.constant 0 : i32
    return %c0_i32, %c0_i32_0 : i32, i32
  }
  func.func @transform_4(%arg0: i32) -> (i32, i32) {
    %c0_i32 = arith.constant 0 : i32
    %c0_i32_0 = arith.constant 0 : i32
    %c0_i32_1 = arith.constant 0 : i32
    return %c0_i32, %c0_i32_0 : i32, i32
  }
  func.func @transform_5(%arg0: i32) -> (i32, i32) {
    %c0_i32 = arith.constant 0 : i32
    %c0_i32_0 = arith.constant 0 : i32
    %c0_i32_1 = arith.constant 0 : i32
    return %c0_i32, %c0_i32_0 : i32, i32
  }
  func.func @transform_6(%arg0: i32) -> (i32, i32) {
    %c0_i32 = arith.constant 0 : i32
    %c0_i32_0 = arith.constant 0 : i32
    return %arg0, %c0_i32 : i32, i32
  }
}

</mosaic_0001>

<bundles_post_ra>
// kernel: tpu_custom_call.1
= control target key start
LH: loop header
LB: loop body
LE: loop exit
PB: predicated region body
PF: predicated region fallthrough
CT: control target
= control target key end

     0   :  { %11 = vsyncpa [#allocation3], 0  ;;  %s2803_s0 = inlined_call_operand.hbm [shape: bf16[8,16,16], index: 0, kind: input, shape index: {}]   ;;  %s2804_s1 = inlined_call_operand.vmem [shape: bf16[16,128], index: 1, kind: input, shape index: {}]   ;;  %s2805_s2 = inlined_call_operand.hbm [shape: f32[32,128], index: 2, kind: input, shape index: {}]   ;;  %s2806_s3 = inlined_call_operand.vmem [shape: f32[1,128], index: 3, kind: input, shape index: {}]   ;;  %s2807_s4 = inlined_call_operand.vmem [shape: bf16[32,4], index: 4, kind: input, shape index: {}]   ;;  %s2808_s5 = inlined_call_operand.vmem [shape: f32[1,4], index: 5, kind: input, shape index: {}]   ;;  %s2809_s6 = inlined_call_operand.hbm [shape: f32[16,128], index: 6, kind: output, shape index: {}]  }
   0x1   :  { %12 = vsyncpa [#allocation6], 0 }
   0x2   :  { %13 = vsyncpa [#allocation4], 0  ;;  %s2358_s21 = smov [#allocation2]   ;;  %s2286_s25 = scalar_lea.hbm %s2803_s0, 1024 }
   0x3   :  { %s19_s22 = sshll.u32 %s2358_s21, 4  ;;  %p2287_p0 = scmp.ne.s32.totalorder %s2803_s0, %s2286_s25  ;;  %s20_s22 = int_to_ptr.vmem [resolvable:$true] %s19_s22 }
   0x4   :  { %p2290_p1 = scmp.lt.u32.totalorder %s2286_s25, %s2803_s0 }
   0x6   :  { %p2292_p2 = pnand %p2290_p1, %p2287_p0 }
   0x8   :  { %2295 = shalt.err (!%p2292_p2)
}
   0x9   :  { %s2296_s30 = scalar_lea.vmem %s20_s22, 1024  ;;  %p2301_p4 = scmp.lt.s32.totalorder %s20_s22, %s20_s22 }
   0xa   :  { %p2297_p3 = scmp.ne.s32.totalorder %s20_s22, %s2296_s30  ;;  %p2302_p5 = scmp.lt.s32.totalorder %s2296_s30, %s2296_s30 }
   0xc   :  { %p2303_p6 = por %p2302_p5, %p2301_p4 }
   0xe   :  { %p2304_p7 = pnand %p2303_p6, %p2297_p3 }
  0x10   :  { %2307 = shalt.err (!%p2304_p7)
}
  0x11   :  { %s2359_s7 = smov 64   ;;  %s2360_s8 = smov 4  }
  0x12   :  { %25 = dma.hbm_to_vmem [thread:$0]  %s2803_s0, 1024, %s20_s22, [#allocation3], %s2359_s7, %s2359_s7, %s2360_s8  }
  0x13   :  { %s2361_s11 = smov [#allocation5]   ;;  %s2308_s15 = scalar_lea.hbm %s2805_s2, 512 }
  0x14   :  { %s33_s12 = sshll.u32 %s2361_s11, 4  ;;  %p2309_p8 = scmp.ne.s32.totalorder %s2805_s2, %s2308_s15  ;;  %s34_s12 = int_to_ptr.vmem [resolvable:$true] %s33_s12 }
  0x15   :  { %p2312_p9 = scmp.lt.u32.totalorder %s2308_s15, %s2805_s2 }
  0x17   :  { %p2314_p10 = pnand %p2312_p9, %p2309_p8 }
  0x19   :  { %2317 = shalt.err (!%p2314_p10)
}
  0x1a   :  { %s2318_s20 = scalar_lea.vmem %s34_s12, 512  ;;  %p2323_p12 = scmp.lt.s32.totalorder %s34_s12, %s34_s12 }
  0x1b   :  { %p2319_p11 = scmp.ne.s32.totalorder %s34_s12, %s2318_s20  ;;  %p2324_p13 = scmp.lt.s32.totalorder %s2318_s20, %s2318_s20 }
  0x1d   :  { %p2325_p0 = por %p2324_p13, %p2323_p12 }
  0x1f   :  { %p2326_p1 = pnand %p2325_p0, %p2319_p11 }
  0x21   :  { %2329 = shalt.err (!%p2326_p1)
}
  0x22   :  { %s2362_s0 = smov 128   ;;  %s2363_s21 = smov 8  }
  0x23   :  { %39 = dma.hbm_to_vmem [thread:$0]  %s2805_s2, 512, %s34_s12, [#allocation6], %s2362_s0, %s2362_s0, %s2363_s21  }
  0x24   :  { %2352 = dma.done.wait [#allocation3], 1024  }
  0x25   :  { %2353 = vsyncadd [#allocation3], 4294966272 }
  0x26   :  { %2354 = dma.done.wait [#allocation6], 512  }
  0x27   :  { %2355 = vsyncadd [#allocation6], 4294966784  ;;  %v2364_v0 = vmov 0.0   ;;  %v2139_v1 = vld [vmem:[%s2804_s1] sm:$0xff]   ;;  %v56_v3 = vld [vmem:[#allocation5 + $0x8] sm:$0xff]  ;;  %vm128_vm0 = vcmask 130048  }
  0x28   :  { %1953 = vmatprep.mubr.f32.mxu1 %v2364_v0  ;;  %v55_v2 = vld [vmem:[#allocation5] sm:$0xff]  ;;  %1927 = vmatprep.subr.bf16.mxu0 %v2139_v1  ;;  %v2141_v6 = vld [vmem:[#allocation2 + $0x8] sm:$0xff]   ;;  %v57_v7 = vld [vmem:[#allocation5 + $0x10] sm:$0xff]  ;;  %vm250_vm1 = vcmask 261120   ;;  %vm1479_vm2 = vcmask 130112   ;;  %vm1544_vm3 = vcmask 1041409  }
  0x29   :  { %v2445_v4 = vpack.c.bf16 %v56_v3, %v55_v2  ;;  %v2140_v5 = vld [vmem:[#allocation2] sm:$0xff]   ;;  %1928 = vmatpush3.bf16.msra.mxu0 %v2139_v1  ;;  %v58_v8 = vld [vmem:[#allocation5 + $0x18] sm:$0xff]  ;;  %vm1546_vm4 = vcmask 1042434   ;;  %vm1548_vm5 = vcmask 1043459   ;;  %vm1550_vm6 = vcmask 1044484  }
  0x2a   :  { %1929 = vmatprep.mubr.msk.bf16.mxu0 %vm128_vm0, %v2140_v5  ;;  %v2450_v9 = vpack.c.bf16 %v58_v8, %v57_v7  ;;  %v2471_v11 = vld [vmem:[%s2806_s3] ss:$0 sm:$0xff]  ;;  %s2365_s3 = smov 32   ;;  %vm1552_vm7 = vcmask 1045509   ;;  %vm1554_vm8 = vcmask 1046534   ;;  %vm1556_vm9 = vcmask 1047559  }
  0x2b   :  { %2042 = vmatprep.subr.bf16.mxu1 %v2445_v4  ;;  %2074 = vmatprep.subr.bf16.mxu0 %v2445_v4  ;;  %vm1591_vm10 = vcmask 64512   ;;  %vm2374_vm11 = vmmov 0   ;;  %vm1789_vm12 = vcmask 31744   ;;  %vm1792_vm13 = vcmask 97280  }
  0x2c   :  { %2044 = vmatpush3.bf16.msra.mxu1 %v2445_v4  ;;  %1930 = vmatmul.mubr.msk.bf16.vlgmr.msra.gmra.mrb[0].mxu0 %vm128_vm0, %v2141_v6 }
  0x2d   :  { %2046 = vmatprep.subr.bf16.mxu1 %v2450_v9  ;;  %2076 = vmatpush3.bf16.msra.mxu0 %v2445_v4 }
  0x2e   :  { %2078 = vmatprep.subr.bf16.mxu0 %v2450_v9 }
  0x30   :  { %2048 = vmatpush3.bf16.msra.mxu1 %v2450_v9 }
  0x31   :  { %2050 = vmatprep.subr.bf16.mxu1 %v2445_v4  ;;  %2080 = vmatpush3.bf16.msra.mxu0 %v2450_v9 }
  0x32   :  { %2090 = vmatprep.subr.bf16.mxu0 %v2445_v4 }
  0x33   :  { %1954 = vmatmul.mubr.f32.vlgmr.msra.gmra.mrb[0].mxu1 %v2364_v0 }
  0x34   :  { %2052 = vmatpush3.bf16.msra.mxu1 %v2445_v4 }
  0x35   :  { %2054 = vmatprep.subr.bf16.mxu1 %v2450_v9 }
  0x38   :  { %2056 = vmatpush3.bf16.msra.mxu1 %v2450_v9 }
  0x39   :  { %2058 = vmatprep.subr.bf16.mxu1 %v2445_v4 }
  0xff   :  { %v2466_v10 = vpop.f32.mrb[0].mxu0 }
 0x100   :  { %v187_v12 = vpop.f32.mrb[1].mxu0  ;;  %v196_v50 = vadd.f32 %v2466_v10, %v2471_v11 }
 0x101   :  { %v1932_v13 = vpop.f32.mrb[2].mxu0  ;;  %v188_v15 = vadd.f32 %v2471_v11, %v187_v12 }
 0x102   :  { %v190_v14 = vpop.f32.mrb[3].mxu0  ;;  %v199_v49 = vadd.f32 %v1932_v13, %v2471_v11 }
 0x103   :  { %v191_v16 = vadd.f32 %v2471_v11, %v190_v14 }
 0x106   :  { %v1955_v17 = vpop.f32.mrb[0].mxu1 }
 0x107   :  { %v330_v18 = vadd.f32 %v1955_v17, %v191_v16  ;;  %v320_v19 = vpop.f32.mrb[1].mxu1  ;;  %v2143_v16 = vld [vmem:[#allocation2 + $0x18] sm:$0xff]  }
 0x108   :  { %v329_v20 = vadd.f32 %v320_v19, %v188_v15  ;;  %v2142_v15 = vld [vmem:[#allocation2 + $0x10] sm:$0xff]  }
 0x109   :  { %v1834_v24 = vmul.f32 -1.442695, %v330_v18  ;;  %1933 = vmatprep.mubr.msk.bf16.mxu0 %vm128_vm0, %v2142_v15 }
 0x10a   :  { %2150 = vtanh.f32 %v329_v20  ;;  %v1833_v23 = vmul.f32 -1.442695, %v329_v20  ;;  %1934 = vmatmul.mubr.msk.bf16.gmra.mrb[4].mxu0 %vm128_vm0, %v2143_v16 }
 0x10b   :  { %2152 = vtanh.f32 %v330_v18 }
 0x10c   :  { %2154 = vpow2.f32 %v1833_v23 }
 0x10d   :  { %2156 = vpow2.f32 %v1834_v24 }
 0x114   :  { %v2151_v21 = vpop.eup %2150 }
 0x115   :  { %349 = vrot.lane.b32.xlu0 %v2151_v21, %s2359_s7  ;;  %v2153_v22 = vpop.eup %2152 }
 0x116   :  { %v2155_v25 = vpop.eup %2154 }
 0x117   :  { %v337_v26 = vadd.f32 1.0, %v2155_v25  ;;  %v2157_v27 = vpop.eup %2156 }
 0x118   :  { %v338_v28 = vadd.f32 1.0, %v2157_v27 }
 0x119   :  { %351 = vrot.lane.b32.xlu0 %v2153_v22, %s2359_s7  ;;  %2158 = vrcp.f32 %v337_v26 }
 0x11a   :  { %2160 = vrcp.f32 %v338_v28 }
 0x123   :  { %v2159_v29 = vpop.eup %2158 }
 0x124   :  { %v2161_v32 = vpop.eup %2160  ;;  %v345_v35 = vmul.f32 0.0, %v2159_v29 }
 0x125   :  { %v346_v38 = vmul.f32 0.0, %v2161_v32 }
 0x187   :  { %v350_v30 = vpop.permute.xlu0 %349 }
 0x188   :  { %v355_v31 = vmul.f32 %v2159_v29, %v350_v30 }
 0x18a   :  { %359 = vrot.lane.b32.xlu1 %v355_v31, %s2365_s3 }
 0x18b   :  { %v352_v33 = vpop.permute.xlu0 %351 }
 0x18c   :  { %v356_v34 = vmul.f32 %v2161_v32, %v352_v33 }
 0x18e   :  { %361 = vrot.lane.b32.xlu1 %v356_v34, %s2365_s3 }
 0x1dd   :  { %v2514_v23 = vpop.f32.mrb[4].mxu0 }
 0x1de   :  { %v203_v24 = vpop.f32.mrb[5].mxu0 }
 0x1df   :  { %v2516_v25 = vpop.f32.mrb[6].mxu0  ;;  %v204_v30 = vadd.f32 %v2471_v11, %v203_v24 }
 0x1e0   :  { %v206_v26 = vpop.f32.mrb[7].mxu0 }
 0x1fc   :  { %v360_v36 = vpop.permute.xlu1 %359 }
 0x1fd   :  { %v365_v37 = vadd.f32 %v360_v36, %v345_v35 }
 0x1ff   :  { %2162 = vtanh.f32 %v365_v37 }
 0x200   :  { %v362_v39 = vpop.permute.xlu1 %361 }
 0x201   :  { %v366_v40 = vadd.f32 %v362_v39, %v346_v38 }
 0x203   :  { %2164 = vtanh.f32 %v366_v40 }
 0x209   :  { %v2163_v41 = vpop.eup %2162 }
 0x20a   :  { %371 = vrot.lane.b32.xlu0 %v2163_v41, %s2359_s7 }
 0x20d   :  { %v2165_v42 = vpop.eup %2164 }
 0x20e   :  { %373 = vrot.lane.b32.xlu1 %v2165_v42, %s2359_s7 }
 0x27c   :  { %v372_v43 = vpop.permute.xlu0 %371 }
 0x27d   :  { %v2481_v44 = vmul.f32 %v2159_v29, %v372_v43  ;;  %v207_v29 = vadd.f32 %v2471_v11, %v206_v26 }
 0x27f   :  { %381 = vrot.lane.b32.xlu0 %v2481_v44, %s2365_s3 }
 0x280   :  { %v374_v45 = vpop.permute.xlu1 %373 }
 0x281   :  { %v2485_v46 = vmul.f32 %v2161_v32, %v374_v45 }
 0x283   :  { %383 = vrot.lane.b32.xlu1 %v2485_v46, %s2365_s3 }
 0x2f1   :  { %v382_v47 = vpop.permute.xlu0 %381 }
 0x2f2   :  { %1964 = vmatprep.mubr.msk.f32.mxu1 %vm250_vm1, %v382_v47 }
 0x2f5   :  { %v384_v48 = vpop.permute.xlu1 %383 }
 0x2f6   :  { %1965 = vmatmul.mubr.msk.f32.vlgmr.msra.gmra.mrb[2].mxu1 %vm250_vm1, %v384_v48 }
 0x2f7   :  { %2060 = vmatpush3.bf16.msra.mxu1 %v2445_v4 }
 0x2f8   :  { %2062 = vmatprep.subr.bf16.mxu1 %v2450_v9 }
 0x2fb   :  { %2064 = vmatpush3.bf16.msra.mxu1 %v2450_v9 }
 0x2fc   :  { %2066 = vmatprep.subr.bf16.mxu1 %v2445_v4 }
 0x3c9   :  { %v1966_v51 = vpop.f32.mrb[2].mxu1 }
 0x3ca   :  { %v465_v52 = vadd.f32 %v1966_v51, %v199_v49  ;;  %v455_v53 = vpop.f32.mrb[3].mxu1 }
 0x3cb   :  { %v464_v54 = vadd.f32 %v455_v53, %v196_v50 }
 0x3cc   :  { %2166 = vtanh.f32 %v465_v52  ;;  %v1838_v57 = vmul.f32 -1.442695, %v465_v52 }
 0x3cd   :  { %2168 = vtanh.f32 %v464_v54  ;;  %v1837_v58 = vmul.f32 -1.442695, %v464_v54 }
 0x3ce   :  { %2170 = vpow2.f32 %v1838_v57 }
 0x3cf   :  { %2172 = vpow2.f32 %v1837_v58 }
 0x3d6   :  { %v2167_v55 = vpop.eup %2166 }
 0x3d7   :  { %v2169_v56 = vpop.eup %2168  ;;  %486 = vrot.lane.b32.xlu1 %v2167_v55, %s2359_s7 }
 0x3d8   :  { %484 = vrot.lane.b32.xlu0 %v2169_v56, %s2359_s7  ;;  %v2171_v59 = vpop.eup %2170 }
 0x3d9   :  { %v2173_v60 = vpop.eup %2172  ;;  %v473_v61 = vadd.f32 1.0, %v2171_v59 }
 0x3da   :  { %v472_v62 = vadd.f32 1.0, %v2173_v60 }
 0x3db   :  { %2174 = vrcp.f32 %v473_v61 }
 0x3dc   :  { %2176 = vrcp.f32 %v472_v62 }
 0x3e5   :  { %v2175_v63 = vpop.eup %2174 }
 0x3e6   :  { %v2177_v2 = vpop.eup %2176  ;;  %v481_v7 = vmul.f32 %v2175_v63, %v366_v40 }
 0x3e7   :  { %v480_v10 = vmul.f32 %v2177_v2, %v365_v37 }
 0x449   :  { %v487_v1 = vpop.permute.xlu1 %486 }
 0x44a   :  { %v491_v3 = vmul.f32 %v2175_v63, %v487_v1  ;;  %v485_v5 = vpop.permute.xlu0 %484 }
 0x44b   :  { %v490_v6 = vmul.f32 %v2177_v2, %v485_v5 }
 0x44c   :  { %496 = vrot.lane.b32.xlu1 %v491_v3, %s2365_s3  ;;  %v212_v3 = vadd.f32 %v2514_v23, %v2471_v11 }
 0x44d   :  { %494 = vrot.lane.b32.xlu0 %v490_v6, %s2365_s3 }
 0x4be   :  { %v497_v8 = vpop.permute.xlu1 %496 }
 0x4bf   :  { %v501_v12 = vadd.f32 %v497_v8, %v481_v7  ;;  %v495_v13 = vpop.permute.xlu0 %494 }
 0x4c0   :  { %v500_v14 = vadd.f32 %v495_v13, %v480_v10 }
 0x4c1   :  { %2178 = vtanh.f32 %v501_v12 }
 0x4c2   :  { %2180 = vtanh.f32 %v500_v14 }
 0x4cb   :  { %v2179_v17 = vpop.eup %2178 }
 0x4cc   :  { %v2181_v18 = vpop.eup %2180  ;;  %508 = vrot.lane.b32.xlu1 %v2179_v17, %s2359_s7 }
 0x4cd   :  { %506 = vrot.lane.b32.xlu0 %v2181_v18, %s2359_s7 }
 0x53e   :  { %v509_v19 = vpop.permute.xlu1 %508 }
 0x53f   :  { %v2506_v20 = vmul.f32 %v2175_v63, %v509_v19  ;;  %v507_v21 = vpop.permute.xlu0 %506 }
 0x540   :  { %v2508_v22 = vmul.f32 %v2177_v2, %v507_v21  ;;  %v215_v2 = vadd.f32 %v2516_v25, %v2471_v11 }
 0x541   :  { %518 = vrot.lane.b32.xlu1 %v2506_v20, %s2365_s3 }
 0x542   :  { %516 = vrot.lane.b32.xlu0 %v2508_v22, %s2365_s3 }
 0x5b3   :  { %v519_v28 = vpop.permute.xlu1 %518 }
 0x5b4   :  { %v517_v27 = vpop.permute.xlu0 %516 }
 0x5b5   :  { %1975 = vmatprep.mubr.msk.f32.mxu1 %vm250_vm1, %v517_v27 }
 0x5b6   :  { %1976 = vmatmul.mubr.msk.f32.vlgmr.msra.gmra.mrb[4].mxu1 %vm250_vm1, %v519_v28 }
 0x5b7   :  { %2068 = vmatpush3.bf16.msra.mxu1 %v2445_v4 }
 0x5b8   :  { %2070 = vmatprep.subr.bf16.mxu1 %v2450_v9 }
 0x5bb   :  { %2072 = vmatpush3.bf16.msra.mxu1 %v2450_v9 }
 0x5bc   :  { %2082 = vmatprep.subr.bf16.mxu1 %v2445_v4 }
 0x689   :  { %v1977_v31 = vpop.f32.mrb[4].mxu1 }
 0x68a   :  { %v600_v32 = vadd.f32 %v1977_v31, %v207_v29  ;;  %v590_v33 = vpop.f32.mrb[5].mxu1 }
 0x68b   :  { %v599_v34 = vadd.f32 %v590_v33, %v204_v30  ;;  %v2144_v33 = vld [vmem:[#allocation2 + $0x20] sm:$0xff]  }
 0x68c   :  { %2182 = vtanh.f32 %v600_v32  ;;  %v1842_v37 = vmul.f32 -1.442695, %v600_v32  ;;  %1937 = vmatprep.mubr.msk.bf16.mxu0 %vm128_vm0, %v2144_v33 }
 0x68d   :  { %2184 = vtanh.f32 %v599_v34  ;;  %v1841_v38 = vmul.f32 -1.442695, %v599_v34  ;;  %v2145_v34 = vld [vmem:[#allocation2 + $0x28] sm:$0xff]  }
 0x68e   :  { %2186 = vpow2.f32 %v1842_v37  ;;  %1938 = vmatmul.mubr.msk.bf16.gmra.mrb[8].mxu0 %vm128_vm0, %v2145_v34 }
 0x68f   :  { %2188 = vpow2.f32 %v1841_v38 }
 0x696   :  { %v2183_v35 = vpop.eup %2182 }
 0x697   :  { %v2185_v36 = vpop.eup %2184  ;;  %621 = vrot.lane.b32.xlu1 %v2183_v35, %s2359_s7  ;;  %v2146_v35 = vld [vmem:[#allocation2 + $0x30] sm:$0xff]  }
 0x698   :  { %619 = vrot.lane.b32.xlu0 %v2185_v36, %s2359_s7  ;;  %v2187_v39 = vpop.eup %2186  ;;  %1941 = vmatprep.mubr.msk.bf16.mxu0 %vm128_vm0, %v2146_v35  ;;  %v2147_v36 = vld [vmem:[#allocation2 + $0x38] sm:$0xff]  }
 0x699   :  { %v2189_v40 = vpop.eup %2188  ;;  %v608_v41 = vadd.f32 1.0, %v2187_v39  ;;  %1942 = vmatmul.mubr.msk.bf16.gmra.mrb[12].mxu0 %vm128_vm0, %v2147_v36 }
 0x69a   :  { %v607_v42 = vadd.f32 1.0, %v2189_v40 }
 0x69b   :  { %2190 = vrcp.f32 %v608_v41 }
 0x69c   :  { %2192 = vrcp.f32 %v607_v42 }
 0x6a5   :  { %v2191_v43 = vpop.eup %2190 }
 0x6a6   :  { %v2193_v47 = vpop.eup %2192  ;;  %v616_v51 = vmul.f32 %v2191_v43, %v501_v12 }
 0x6a7   :  { %v615_v53 = vmul.f32 %v2193_v47, %v500_v14 }
 0x709   :  { %v622_v45 = vpop.permute.xlu1 %621 }
 0x70a   :  { %v626_v48 = vmul.f32 %v2191_v43, %v622_v45  ;;  %v620_v49 = vpop.permute.xlu0 %619 }
 0x70b   :  { %v625_v50 = vmul.f32 %v2193_v47, %v620_v49 }
 0x70c   :  { %631 = vrot.lane.b32.xlu1 %v626_v48, %s2365_s3 }
 0x70d   :  { %629 = vrot.lane.b32.xlu0 %v625_v50, %s2365_s3 }
 0x77e   :  { %v632_v52 = vpop.permute.xlu1 %631 }
 0x77f   :  { %v636_v54 = vadd.f32 %v632_v52, %v616_v51  ;;  %v630_v55 = vpop.permute.xlu0 %629 }
 0x780   :  { %v635_v56 = vadd.f32 %v630_v55, %v615_v53 }
 0x781   :  { %2194 = vtanh.f32 %v636_v54 }
 0x782   :  { %2196 = vtanh.f32 %v635_v56 }
 0x78b   :  { %v2195_v57 = vpop.eup %2194 }
 0x78c   :  { %v2197_v58 = vpop.eup %2196  ;;  %643 = vrot.lane.b32.xlu1 %v2195_v57, %s2359_s7 }
 0x78d   :  { %641 = vrot.lane.b32.xlu0 %v2197_v58, %s2359_s7 }
 0x7fe   :  { %v644_v59 = vpop.permute.xlu1 %643 }
 0x7ff   :  { %v2532_v60 = vmul.f32 %v2191_v43, %v644_v59  ;;  %v642_v61 = vpop.permute.xlu0 %641  ;;  %v2574_v43 = vpop.f32.mrb[8].mxu0 }
 0x800   :  { %v2534_v62 = vmul.f32 %v2193_v47, %v642_v61  ;;  %v219_v45 = vpop.f32.mrb[9].mxu0  ;;  %v228_v34 = vadd.f32 %v2574_v43, %v2471_v11 }
 0x801   :  { %653 = vrot.lane.b32.xlu1 %v2532_v60, %s2365_s3  ;;  %v2576_v47 = vpop.f32.mrb[10].mxu0 }
 0x802   :  { %651 = vrot.lane.b32.xlu0 %v2534_v62, %s2365_s3  ;;  %v222_v48 = vpop.f32.mrb[11].mxu0  ;;  %v231_v33 = vadd.f32 %v2576_v47, %v2471_v11 }
 0x803   :  { %v2578_v49 = vpop.f32.mrb[12].mxu0  ;;  %v223_v55 = vadd.f32 %v2471_v11, %v222_v48 }
 0x804   :  { %v2580_v50 = vpop.f32.mrb[13].mxu0 }
 0x805   :  { %v2582_v51 = vpop.f32.mrb[14].mxu0 }
 0x806   :  { %v2584_v52 = vpop.f32.mrb[15].mxu0 }
 0x873   :  { %v654_v1 = vpop.permute.xlu1 %653 }
 0x874   :  { %v652_v63 = vpop.permute.xlu0 %651 }
 0x875   :  { %1986 = vmatprep.mubr.msk.f32.mxu1 %vm250_vm1, %v652_v63 }
 0x876   :  { %1987 = vmatmul.mubr.msk.f32.vlgmr.msra.gmra.mrb[6].mxu1 %vm250_vm1, %v654_v1 }
 0x877   :  { %2084 = vmatpush3.bf16.msra.mxu1 %v2445_v4 }
 0x878   :  { %2086 = vmatprep.subr.bf16.mxu1 %v2450_v9 }
 0x87b   :  { %2088 = vmatpush3.bf16.msra.mxu1 %v2450_v9 }
 0x87c   :  { %2098 = vmatprep.subr.bf16.mxu1 %v2445_v4 }
 0x949   :  { %v1988_v5 = vpop.f32.mrb[6].mxu1 }
 0x94a   :  { %v735_v6 = vadd.f32 %v1988_v5, %v215_v2  ;;  %v725_v7 = vpop.f32.mrb[7].mxu1 }
 0x94b   :  { %v734_v8 = vadd.f32 %v725_v7, %v212_v3 }
 0x94c   :  { %2198 = vtanh.f32 %v735_v6  ;;  %v1846_v13 = vmul.f32 -1.442695, %v735_v6 }
 0x94d   :  { %2200 = vtanh.f32 %v734_v8  ;;  %v1845_v14 = vmul.f32 -1.442695, %v734_v8 }
 0x94e   :  { %2202 = vpow2.f32 %v1846_v13 }
 0x94f   :  { %2204 = vpow2.f32 %v1845_v14 }
 0x956   :  { %v2199_v10 = vpop.eup %2198 }
 0x957   :  { %v2201_v12 = vpop.eup %2200  ;;  %756 = vrot.lane.b32.xlu1 %v2199_v10, %s2359_s7 }
 0x958   :  { %754 = vrot.lane.b32.xlu0 %v2201_v12, %s2359_s7  ;;  %v2203_v15 = vpop.eup %2202 }
 0x959   :  { %v2205_v16 = vpop.eup %2204  ;;  %v743_v17 = vadd.f32 1.0, %v2203_v15 }
 0x95a   :  { %v742_v18 = vadd.f32 1.0, %v2205_v16 }
 0x95b   :  { %2206 = vrcp.f32 %v743_v17 }
 0x95c   :  { %2208 = vrcp.f32 %v742_v18 }
 0x965   :  { %v2207_v19 = vpop.eup %2206 }
 0x966   :  { %v2209_v23 = vpop.eup %2208  ;;  %v751_v27 = vmul.f32 %v2207_v19, %v636_v54 }
 0x967   :  { %v750_v29 = vmul.f32 %v2209_v23, %v635_v56  ;;  %v220_v56 = vadd.f32 %v2471_v11, %v219_v45 }
 0x9c9   :  { %v757_v21 = vpop.permute.xlu1 %756 }
 0x9ca   :  { %v761_v24 = vmul.f32 %v2207_v19, %v757_v21  ;;  %v755_v25 = vpop.permute.xlu0 %754 }
 0x9cb   :  { %v760_v26 = vmul.f32 %v2209_v23, %v755_v25 }
 0x9cc   :  { %766 = vrot.lane.b32.xlu1 %v761_v24, %s2365_s3 }
 0x9cd   :  { %764 = vrot.lane.b32.xlu0 %v760_v26, %s2365_s3 }
 0xa3e   :  { %v767_v28 = vpop.permute.xlu1 %766 }
 0xa3f   :  { %v2554_v30 = vadd.f32 %v767_v28, %v751_v27  ;;  %v765_v31 = vpop.permute.xlu0 %764 }
 0xa40   :  { %v2556_v32 = vadd.f32 %v765_v31, %v750_v29 }
 0xa41   :  { %2210 = vtanh.f32 %v2554_v30 }
 0xa42   :  { %2212 = vtanh.f32 %v2556_v32 }
 0xa4b   :  { %v2211_v37 = vpop.eup %2210 }
 0xa4c   :  { %v2213_v38 = vpop.eup %2212  ;;  %778 = vrot.lane.b32.xlu1 %v2211_v37, %s2359_s7 }
 0xa4d   :  { %776 = vrot.lane.b32.xlu0 %v2213_v38, %s2359_s7 }
 0xabe   :  { %v779_v39 = vpop.permute.xlu1 %778 }
 0xabf   :  { %v2566_v40 = vmul.f32 %v2207_v19, %v779_v39  ;;  %v777_v41 = vpop.permute.xlu0 %776 }
 0xac0   :  { %v2568_v42 = vmul.f32 %v2209_v23, %v777_v41 }
 0xac1   :  { %788 = vrot.lane.b32.xlu1 %v2566_v40, %s2365_s3 }
 0xac2   :  { %786 = vrot.lane.b32.xlu0 %v2568_v42, %s2365_s3 }
 0xb33   :  { %v789_v54 = vpop.permute.xlu1 %788 }
 0xb34   :  { %v787_v53 = vpop.permute.xlu0 %786 }
 0xb35   :  { %1997 = vmatprep.mubr.msk.f32.mxu0 %vm250_vm1, %v787_v53 }
 0xb36   :  { %1998 = vmatmul.mubr.msk.f32.vlgmr.msra.gmra.mrb[16].mxu0 %vm250_vm1, %v789_v54 }
 0xb37   :  { %2092 = vmatpush3.bf16.msra.mxu0 %v2445_v4 }
 0xb38   :  { %2094 = vmatprep.subr.bf16.mxu0 %v2450_v9 }
 0xb3b   :  { %2096 = vmatpush3.bf16.msra.mxu0 %v2450_v9 }
 0xb3c   :  { %2033 = vmatprep.subr.bf16.mxu0 %v2364_v0 }
 0xc09   :  { %v1999_v57 = vpop.f32.mrb[16].mxu0 }
 0xc0a   :  { %v870_v58 = vadd.f32 %v1999_v57, %v223_v55  ;;  %v860_v59 = vpop.f32.mrb[17].mxu0 }
 0xc0b   :  { %v869_v61 = vadd.f32 %v860_v59, %v220_v56 }
 0xc0c   :  { %2214 = vtanh.f32 %v870_v58  ;;  %v1850_v2 = vmul.f32 -1.442695, %v870_v58 }
 0xc0d   :  { %2216 = vtanh.f32 %v869_v61  ;;  %v1849_v3 = vmul.f32 -1.442695, %v869_v61 }
 0xc0e   :  { %2218 = vpow2.f32 %v1850_v2 }
 0xc0f   :  { %2220 = vpow2.f32 %v1849_v3 }
 0xc16   :  { %v2215_v63 = vpop.eup %2214 }
 0xc17   :  { %v2217_v1 = vpop.eup %2216  ;;  %891 = vrot.lane.b32.xlu1 %v2215_v63, %s2359_s7 }
 0xc18   :  { %889 = vrot.lane.b32.xlu0 %v2217_v1, %s2359_s7  ;;  %v2219_v5 = vpop.eup %2218 }
 0xc19   :  { %v2221_v6 = vpop.eup %2220  ;;  %v878_v7 = vadd.f32 1.0, %v2219_v5 }
 0xc1a   :  { %v877_v8 = vadd.f32 1.0, %v2221_v6 }
 0xc1b   :  { %2222 = vrcp.f32 %v878_v7 }
 0xc1c   :  { %2224 = vrcp.f32 %v877_v8 }
 0xc25   :  { %v2223_v10 = vpop.eup %2222 }
 0xc26   :  { %v2225_v13 = vpop.eup %2224  ;;  %v886_v17 = vmul.f32 %v2223_v10, %v2554_v30 }
 0xc27   :  { %v885_v19 = vmul.f32 %v2225_v13, %v2556_v32 }
 0xc89   :  { %v892_v12 = vpop.permute.xlu1 %891 }
 0xc8a   :  { %v896_v14 = vmul.f32 %v2223_v10, %v892_v12  ;;  %v890_v15 = vpop.permute.xlu0 %889 }
 0xc8b   :  { %v895_v16 = vmul.f32 %v2225_v13, %v890_v15  ;;  %v239_v15 = vadd.f32 %v2471_v11, %v2584_v52 }
 0xc8c   :  { %901 = vrot.lane.b32.xlu1 %v896_v14, %s2365_s3 }
 0xc8d   :  { %899 = vrot.lane.b32.xlu0 %v895_v16, %s2365_s3  ;;  %v236_v16 = vadd.f32 %v2471_v11, %v2580_v50 }
 0xcfe   :  { %v902_v18 = vpop.permute.xlu1 %901 }
 0xcff   :  { %v906_v21 = vadd.f32 %v902_v18, %v886_v17  ;;  %v900_v23 = vpop.permute.xlu0 %899 }
 0xd00   :  { %v905_v24 = vadd.f32 %v900_v23, %v885_v19 }
 0xd01   :  { %2226 = vtanh.f32 %v906_v21 }
 0xd02   :  { %2228 = vtanh.f32 %v905_v24 }
 0xd0b   :  { %v2227_v25 = vpop.eup %2226 }
 0xd0c   :  { %v2229_v26 = vpop.eup %2228  ;;  %913 = vrot.lane.b32.xlu1 %v2227_v25, %s2359_s7 }
 0xd0d   :  { %911 = vrot.lane.b32.xlu0 %v2229_v26, %s2359_s7 }
 0xd7e   :  { %v914_v27 = vpop.permute.xlu1 %913 }
 0xd7f   :  { %v2602_v28 = vmul.f32 %v2223_v10, %v914_v27  ;;  %v912_v29 = vpop.permute.xlu0 %911 }
 0xd80   :  { %v2604_v31 = vmul.f32 %v2225_v13, %v912_v29 }
 0xd81   :  { %923 = vrot.lane.b32.xlu1 %v2602_v28, %s2365_s3 }
 0xd82   :  { %921 = vrot.lane.b32.xlu0 %v2604_v31, %s2365_s3 }
 0xdf3   :  { %v924_v32 = vpop.permute.xlu1 %923 }
 0xdf4   :  { %v922_v30 = vpop.permute.xlu0 %921 }
 0xdf5   :  { %2008 = vmatprep.mubr.msk.f32.mxu1 %vm250_vm1, %v922_v30 }
 0xdf6   :  { %2009 = vmatmul.mubr.msk.f32.vlgmr.msra.gmra.mrb[8].mxu1 %vm250_vm1, %v924_v32 }
 0xdf7   :  { %2100 = vmatpush3.bf16.msra.mxu1 %v2445_v4 }
 0xdf8   :  { %2102 = vmatprep.subr.bf16.mxu1 %v2450_v9 }
 0xdfb   :  { %2104 = vmatpush3.bf16.msra.mxu1 %v2450_v9 }
 0xec9   :  { %v2010_v35 = vpop.f32.mrb[8].mxu1 }
 0xeca   :  { %v1005_v36 = vadd.f32 %v2010_v35, %v231_v33  ;;  %v995_v37 = vpop.f32.mrb[9].mxu1 }
 0xecb   :  { %v1004_v38 = vadd.f32 %v995_v37, %v228_v34 }
 0xecc   :  { %2230 = vtanh.f32 %v1005_v36  ;;  %v1854_v4 = vmul.f32 -1.442695, %v1005_v36 }
 0xecd   :  { %2232 = vtanh.f32 %v1004_v38  ;;  %v1853_v9 = vmul.f32 -1.442695, %v1004_v38 }
 0xece   :  { %2234 = vpow2.f32 %v1854_v4 }
 0xecf   :  { %2236 = vpow2.f32 %v1853_v9 }
 0xed6   :  { %v2231_v39 = vpop.eup %2230 }
 0xed7   :  { %v2233_v41 = vpop.eup %2232  ;;  %1026 = vrot.lane.b32.xlu1 %v2231_v39, %s2359_s7 }
 0xed8   :  { %1024 = vrot.lane.b32.xlu0 %v2233_v41, %s2359_s7  ;;  %v2235_v45 = vpop.eup %2234 }
 0xed9   :  { %v2237_v47 = vpop.eup %2236  ;;  %v1013_v48 = vadd.f32 1.0, %v2235_v45 }
 0xeda   :  { %v1012_v43 = vadd.f32 1.0, %v2237_v47 }
 0xedb   :  { %2238 = vrcp.f32 %v1013_v48 }
 0xedc   :  { %2240 = vrcp.f32 %v1012_v43 }
 0xee5   :  { %v2239_v53 = vpop.eup %2238 }
 0xee6   :  { %v2241_v55 = vpop.eup %2240  ;;  %v1021_v59 = vmul.f32 %v2239_v53, %v906_v21 }
 0xee7   :  { %v1020_v63 = vmul.f32 %v2241_v55, %v905_v24 }
 0xf49   :  { %v1027_v54 = vpop.permute.xlu1 %1026 }
 0xf4a   :  { %v1031_v56 = vmul.f32 %v2239_v53, %v1027_v54  ;;  %v1025_v57 = vpop.permute.xlu0 %1024 }
 0xf4b   :  { %v1030_v58 = vmul.f32 %v2241_v55, %v1025_v57  ;;  %v247_v57 = vadd.f32 %v2582_v51, %v2471_v11 }
 0xf4c   :  { %1036 = vrot.lane.b32.xlu1 %v1031_v56, %s2365_s3 }
 0xf4d   :  { %1034 = vrot.lane.b32.xlu0 %v1030_v58, %s2365_s3  ;;  %v244_v58 = vadd.f32 %v2578_v49, %v2471_v11 }
 0xfbe   :  { %v1037_v61 = vpop.permute.xlu1 %1036 }
 0xfbf   :  { %v1041_v1 = vadd.f32 %v1037_v61, %v1021_v59  ;;  %v1035_v2 = vpop.permute.xlu0 %1034 }
 0xfc0   :  { %v1040_v3 = vadd.f32 %v1035_v2, %v1020_v63 }
 0xfc1   :  { %2242 = vtanh.f32 %v1041_v1 }
 0xfc2   :  { %2244 = vtanh.f32 %v1040_v3 }
 0xfcb   :  { %v2243_v5 = vpop.eup %2242 }
 0xfcc   :  { %v2245_v6 = vpop.eup %2244  ;;  %1048 = vrot.lane.b32.xlu1 %v2243_v5, %s2359_s7 }
 0xfcd   :  { %1046 = vrot.lane.b32.xlu0 %v2245_v6, %s2359_s7 }
0x103e   :  { %v1049_v7 = vpop.permute.xlu1 %1048 }
0x103f   :  { %v2625_v8 = vmul.f32 %v2239_v53, %v1049_v7  ;;  %v1047_v10 = vpop.permute.xlu0 %1046 }
0x1040   :  { %v2627_v12 = vmul.f32 %v2241_v55, %v1047_v10 }
0x1041   :  { %1058 = vrot.lane.b32.xlu1 %v2625_v8, %s2365_s3 }
0x1042   :  { %1056 = vrot.lane.b32.xlu0 %v2627_v12, %s2365_s3 }
0x10b3   :  { %v1059_v14 = vpop.permute.xlu1 %1058 }
0x10b4   :  { %v1057_v13 = vpop.permute.xlu0 %1056 }
0x10b5   :  { %2019 = vmatprep.mubr.msk.f32.mxu0 %vm250_vm1, %v1057_v13 }
0x10b6   :  { %2020 = vmatmul.mubr.msk.f32.vlgmr.msra.gmra.mrb[18].mxu0 %vm250_vm1, %v1059_v14 }
0x10b7   :  { %2037 = vmatprep.mubr.msk.bf16.mxu0 %vm2374_vm11, %v2364_v0 }
0x1189   :  { %v2021_v17 = vpop.f32.mrb[18].mxu0 }
0x118a   :  { %v1140_v18 = vadd.f32 %v2021_v17, %v239_v15  ;;  %v1130_v19 = vpop.f32.mrb[19].mxu0 }
0x118b   :  { %v1139_v21 = vadd.f32 %v1130_v19, %v236_v16 }
0x118c   :  { %2246 = vtanh.f32 %v1140_v18  ;;  %v1858_v25 = vmul.f32 -1.442695, %v1140_v18 }
0x118d   :  { %2248 = vtanh.f32 %v1139_v21  ;;  %v1857_v26 = vmul.f32 -1.442695, %v1139_v21 }
0x118e   :  { %2250 = vpow2.f32 %v1858_v25 }
0x118f   :  { %2252 = vpow2.f32 %v1857_v26 }
0x1196   :  { %v2247_v23 = vpop.eup %2246 }
0x1197   :  { %v2249_v24 = vpop.eup %2248  ;;  %1161 = vrot.lane.b32.xlu1 %v2247_v23, %s2359_s7 }
0x1198   :  { %1159 = vrot.lane.b32.xlu0 %v2249_v24, %s2359_s7  ;;  %v2251_v52 = vpop.eup %2250 }
0x1199   :  { %v2253_v27 = vpop.eup %2252  ;;  %v1148_v29 = vadd.f32 1.0, %v2251_v52 }
0x119a   :  { %v1147_v50 = vadd.f32 1.0, %v2253_v27 }
0x119b   :  { %2254 = vrcp.f32 %v1148_v29 }
0x119c   :  { %2256 = vrcp.f32 %v1147_v50 }
0x11a5   :  { %v2255_v30 = vpop.eup %2254 }
0x11a6   :  { %v2257_v33 = vpop.eup %2256  ;;  %v1156_v37 = vmul.f32 %v2255_v30, %v1041_v1 }
0x11a7   :  { %v1155_v39 = vmul.f32 %v2257_v33, %v1040_v3 }
0x1209   :  { %v1162_v32 = vpop.permute.xlu1 %1161 }
0x120a   :  { %v1166_v34 = vmul.f32 %v2255_v30, %v1162_v32  ;;  %v1160_v35 = vpop.permute.xlu0 %1159 }
0x120b   :  { %v1165_v36 = vmul.f32 %v2257_v33, %v1160_v35 }
0x120c   :  { %1171 = vrot.lane.b32.xlu1 %v1166_v34, %s2365_s3 }
0x120d   :  { %1169 = vrot.lane.b32.xlu0 %v1165_v36, %s2365_s3 }
0x127e   :  { %v1172_v38 = vpop.permute.xlu1 %1171 }
0x127f   :  { %v1176_v41 = vadd.f32 %v1172_v38, %v1156_v37  ;;  %v1170_v4 = vpop.permute.xlu0 %1169 }
0x1280   :  { %v1175_v9 = vadd.f32 %v1170_v4, %v1155_v39 }
0x1281   :  { %2258 = vtanh.f32 %v1176_v41 }
0x1282   :  { %2260 = vtanh.f32 %v1175_v9 }
0x128b   :  { %v2259_v45 = vpop.eup %2258 }
0x128c   :  { %v2261_v47 = vpop.eup %2260  ;;  %1183 = vrot.lane.b32.xlu1 %v2259_v45, %s2359_s7 }
0x128d   :  { %1181 = vrot.lane.b32.xlu0 %v2261_v47, %s2359_s7 }
0x12fe   :  { %v1184_v48 = vpop.permute.xlu1 %1183 }
0x12ff   :  { %v2645_v43 = vmul.f32 %v2255_v30, %v1184_v48  ;;  %v1182_v53 = vpop.permute.xlu0 %1181 }
0x1300   :  { %v2647_v54 = vmul.f32 %v2257_v33, %v1182_v53 }
0x1301   :  { %1193 = vrot.lane.b32.xlu1 %v2645_v43, %s2365_s3 }
0x1302   :  { %1191 = vrot.lane.b32.xlu0 %v2647_v54, %s2365_s3 }
0x1373   :  { %v1194_v56 = vpop.permute.xlu1 %1193 }
0x1374   :  { %v1192_v55 = vpop.permute.xlu0 %1191 }
0x1375   :  { %2030 = vmatprep.mubr.msk.f32.mxu1 %vm250_vm1, %v1192_v55 }
0x1376   :  { %2031 = vmatmul.mubr.msk.f32.vlgmr.msra.gmra.mrb[10].mxu1 %vm250_vm1, %v1194_v56 }
0x1449   :  { %v2032_v59 = vpop.f32.mrb[10].mxu1 }
0x144a   :  { %v1275_v61 = vadd.f32 %v2032_v59, %v247_v57  ;;  %v1265_v63 = vpop.f32.mrb[11].mxu1 }
0x144b   :  { %v1274_v1 = vadd.f32 %v1265_v63, %v244_v58 }
0x144c   :  { %2262 = vtanh.f32 %v1275_v61  ;;  %v1862_v5 = vmul.f32 -1.442695, %v1275_v61 }
0x144d   :  { %2264 = vtanh.f32 %v1274_v1  ;;  %v1861_v6 = vmul.f32 -1.442695, %v1274_v1 }
0x144e   :  { %2266 = vpow2.f32 %v1862_v5 }
0x144f   :  { %2268 = vpow2.f32 %v1861_v6 }
0x1456   :  { %v2263_v2 = vpop.eup %2262 }
0x1457   :  { %v2265_v3 = vpop.eup %2264  ;;  %1296 = vrot.lane.b32.xlu1 %v2263_v2, %s2359_s7 }
0x1458   :  { %1294 = vrot.lane.b32.xlu0 %v2265_v3, %s2359_s7  ;;  %v2267_v51 = vpop.eup %2266 }
0x1459   :  { %v2269_v7 = vpop.eup %2268  ;;  %v1283_v10 = vadd.f32 1.0, %v2267_v51 }
0x145a   :  { %v1282_v11 = vadd.f32 1.0, %v2269_v7 }
0x145b   :  { %2270 = vrcp.f32 %v1283_v10 }
0x145c   :  { %2272 = vrcp.f32 %v1282_v11 }
0x1465   :  { %v2271_v49 = vpop.eup %2270 }
0x1466   :  { %v2273_v14 = vpop.eup %2272  ;;  %v1291_v18 = vmul.f32 %v2271_v49, %v1176_v41 }
0x1467   :  { %v1290_v21 = vmul.f32 %v2273_v14, %v1175_v9 }
0x14c9   :  { %v1297_v13 = vpop.permute.xlu1 %1296 }
0x14ca   :  { %v1301_v15 = vmul.f32 %v2271_v49, %v1297_v13  ;;  %v1295_v16 = vpop.permute.xlu0 %1294 }
0x14cb   :  { %v1300_v17 = vmul.f32 %v2273_v14, %v1295_v16 }
0x14cc   :  { %1306 = vrot.lane.b32.xlu1 %v1301_v15, %s2365_s3 }
0x14cd   :  { %1304 = vrot.lane.b32.xlu0 %v1300_v17, %s2365_s3 }
0x153e   :  { %v1307_v19 = vpop.permute.xlu1 %1306 }
0x153f   :  { %v1311_v23 = vadd.f32 %v1307_v19, %v1291_v18  ;;  %v1305_v24 = vpop.permute.xlu0 %1304 }
0x1540   :  { %v1310_v25 = vadd.f32 %v1305_v24, %v1290_v21 }
0x1541   :  { %2274 = vtanh.f32 %v1311_v23 }
0x1542   :  { %2276 = vtanh.f32 %v1310_v25 }
0x154b   :  { %v2275_v26 = vpop.eup %2274 }
0x154c   :  { %v2277_v52 = vpop.eup %2276  ;;  %1318 = vrot.lane.b32.xlu1 %v2275_v26, %s2359_s7 }
0x154d   :  { %1316 = vrot.lane.b32.xlu0 %v2277_v52, %s2359_s7  ;;  %s2375_s7 = smov [#allocation7]  }
0x154e   :  { %s1802_s9 = sshll.u32 %s2375_s7, 4  ;;  %s1803_s9 = int_to_ptr.vmem [resolvable:$true] %s1802_s9 }
0x154f   :  { %p2335_p3 = scmp.lt.s32.totalorder %s1803_s9, %s1803_s9 }
0x15be   :  { %v1319_v27 = vpop.permute.xlu1 %1318 }
0x15bf   :  { %v2665_v29 = vmul.f32 %v2271_v49, %v1319_v27  ;;  %v1317_v50 = vpop.permute.xlu0 %1316 }
0x15c0   :  { %v2667_v30 = vmul.f32 %v2273_v14, %v1317_v50 }
0x15c1   :  { %v1325_v32 = vmul.f32 %v2665_v29, %v2485_v46  ;;  %v1327_v34 = vmul.f32 %v2665_v29, %v2506_v20  ;;  %v1329_v36 = vmul.f32 %v2665_v29, %v2532_v60  ;;  %v1331_v38 = vmul.f32 %v2665_v29, %v2566_v40 }
0x15c2   :  { %v1324_v33 = vmul.f32 %v2667_v30, %v2481_v44  ;;  %v1326_v35 = vmul.f32 %v2667_v30, %v2508_v22  ;;  %v1328_v37 = vmul.f32 %v2667_v30, %v2534_v62  ;;  %v1330_v39 = vmul.f32 %v2667_v30, %v2568_v42 }
0x15c3   :  { %1358 = vrot.lane.b32.xlu1 %v1325_v32, %s2365_s3  ;;  %v1333_v41 = vmul.f32 %v2665_v29, %v2602_v28  ;;  %v1332_v4 = vmul.f32 %v2667_v30, %v2604_v31  ;;  %v1335_v9 = vmul.f32 %v2665_v29, %v2625_v8  ;;  %v1334_v45 = vmul.f32 %v2667_v30, %v2627_v12 }
0x15c4   :  { %1356 = vrot.lane.b32.xlu0 %v1324_v33, %s2365_s3  ;;  %v1337_v47 = vmul.f32 %v2665_v29, %v2645_v43  ;;  %v1336_v48 = vmul.f32 %v2667_v30, %v2647_v54  ;;  %v1339_v53 = vmul.f32 %v2665_v29, %v2665_v29  ;;  %v1338_v55 = vmul.f32 %v2667_v30, %v2667_v30 }
0x15c7   :  { %1362 = vrot.lane.b32.xlu1 %v1327_v34, %s2365_s3 }
0x15c8   :  { %1360 = vrot.lane.b32.xlu0 %v1326_v35, %s2365_s3 }
0x15cb   :  { %1366 = vrot.lane.b32.xlu1 %v1329_v36, %s2365_s3 }
0x15cc   :  { %1364 = vrot.lane.b32.xlu0 %v1328_v37, %s2365_s3  ;;  %v1468_v37 = vlaneseq }
0x15cf   :  { %1370 = vrot.lane.b32.xlu1 %v1331_v38, %s2365_s3 }
0x15d0   :  { %1368 = vrot.lane.b32.xlu0 %v1330_v39, %s2365_s3 }
0x15d3   :  { %1374 = vrot.lane.b32.xlu1 %v1333_v41, %s2365_s3  ;;  %v1469_v41 = vand.u32 127, %v1468_v37 }
0x15d4   :  { %1372 = vrot.lane.b32.xlu0 %v1332_v4, %s2365_s3 }
0x15d7   :  { %1378 = vrot.lane.b32.xlu1 %v1335_v9, %s2365_s3 }
0x15d8   :  { %1376 = vrot.lane.b32.xlu0 %v1334_v45, %s2365_s3  ;;  %v1471_v45 = vshrl.u32 %v1468_v37, 7 }
0x15db   :  { %1382 = vrot.lane.b32.xlu1 %v1337_v47, %s2365_s3  ;;  %v1474_v47 = vadd.s32 4294967288, %v1469_v41 }
0x15dc   :  { %1380 = vrot.lane.b32.xlu0 %v1336_v48, %s2365_s3 }
0x15df   :  { %1386 = vrot.lane.b32.xlu1 %v1339_v53, %s2365_s3 }
0x15e0   :  { %1384 = vrot.lane.b32.xlu0 %v1338_v55, %s2365_s3  ;;  %v1477_v55 = vsub.s32 %v1474_v47, %v1471_v45 }
0x1635   :  { %v1359_v56 = vpop.permute.xlu1 %1358 }
0x1636   :  { %v1357_v57 = vpop.permute.xlu0 %1356  ;;  %v1407_v58 = vsel %vm250_vm1, %v1359_v56, 0.0  ;;  %v1472_v56 = vsub.s32 %v1469_v41, %v1471_v45 }
0x1637   :  { %1408 = vadd.xlane.f32.xlu1 %v1407_v58  ;;  %v1404_v21 = vsel %vm250_vm1, %v1357_v57, 0.0 }
0x1639   :  { %v1363_v59 = vpop.permute.xlu1 %1362 }
0x163a   :  { %v1361_v61 = vpop.permute.xlu0 %1360  ;;  %v1413_v63 = vsel %vm250_vm1, %v1363_v59, 0.0 }
0x163b   :  { %1414 = vadd.xlane.f32.xlu0 %v1413_v63  ;;  %v1410_v26 = vsel %vm250_vm1, %v1361_v61, 0.0 }
0x163d   :  { %v1367_v1 = vpop.permute.xlu1 %1366 }
0x163e   :  { %v1365_v2 = vpop.permute.xlu0 %1364  ;;  %v1419_v3 = vsel %vm250_vm1, %v1367_v1, 0.0 }
0x163f   :  { %1420 = vadd.xlane.f32.xlu0 %v1419_v3  ;;  %v1416_v5 = vsel %vm250_vm1, %v1365_v2, 0.0 }
0x1640   :  { %1417 = vadd.xlane.f32.xlu1 %v1416_v5 }
0x1641   :  { %v1371_v6 = vpop.permute.xlu1 %1370 }
0x1642   :  { %v1369_v51 = vpop.permute.xlu0 %1368  ;;  %v1425_v7 = vsel %vm250_vm1, %v1371_v6, 0.0 }
0x1643   :  { %1426 = vadd.xlane.f32.xlu0 %v1425_v7  ;;  %v1422_v10 = vsel %vm250_vm1, %v1369_v51, 0.0 }
0x1644   :  { %1423 = vadd.xlane.f32.xlu1 %v1422_v10 }
0x1645   :  { %v1375_v11 = vpop.permute.xlu1 %1374 }
0x1646   :  { %v1373_v49 = vpop.permute.xlu0 %1372  ;;  %v1431_v13 = vsel %vm250_vm1, %v1375_v11, 0.0 }
0x1647   :  { %1432 = vadd.xlane.f32.xlu0 %v1431_v13  ;;  %v1428_v14 = vsel %vm250_vm1, %v1373_v49, 0.0 }
0x1648   :  { %1429 = vadd.xlane.f32.xlu1 %v1428_v14 }
0x1649   :  { %v1379_v15 = vpop.permute.xlu1 %1378 }
0x164a   :  { %v1377_v16 = vpop.permute.xlu0 %1376  ;;  %v1437_v17 = vsel %vm250_vm1, %v1379_v15, 0.0 }
0x164b   :  { %1438 = vadd.xlane.f32.xlu0 %v1437_v17  ;;  %v1434_v18 = vsel %vm250_vm1, %v1377_v16, 0.0 }
0x164c   :  { %1435 = vadd.xlane.f32.xlu1 %v1434_v18 }
0x164d   :  { %v1383_v24 = vpop.permute.xlu1 %1382 }
0x164e   :  { %v1381_v19 = vpop.permute.xlu0 %1380  ;;  %v1443_v27 = vsel %vm250_vm1, %v1383_v24, 0.0 }
0x164f   :  { %1405 = vadd.xlane.f32.xlu0 %v1404_v21  ;;  %v1440_v23 = vsel %vm250_vm1, %v1381_v19, 0.0 }
0x1650   :  { %1441 = vadd.xlane.f32.xlu1 %v1440_v23 }
0x1651   :  { %v1387_v50 = vpop.permute.xlu1 %1386 }
0x1652   :  { %v1385_v25 = vpop.permute.xlu0 %1384  ;;  %v1449_v32 = vsel %vm250_vm1, %v1387_v50, 0.0 }
0x1653   :  { %1411 = vadd.xlane.f32.xlu0 %v1410_v26  ;;  %v1446_v52 = vsel %vm250_vm1, %v1385_v25, 0.0 }
0x1654   :  { %1447 = vadd.xlane.f32.xlu1 %v1446_v52 }
0x1657   :  { %1444 = vadd.xlane.f32.xlu0 %v1443_v27 }
0x165b   :  { %1450 = vadd.xlane.f32.xlu0 %v1449_v32 }
0x16c4   :  { %v1409_v34 = vpop.xlane.xlu1 %1408 }
0x16c5   :  { %v1478_v59 = vrot.slane %v1409_v34, %v1477_v55 }
0x16c8   :  { %v1415_v33 = vpop.xlane.xlu0 %1414 }
0x16c9   :  { %v1488_v3 = vrot.slane %v1415_v33, %v1477_v55 }
0x16cc   :  { %v1421_v35 = vpop.xlane.xlu0 %1420 }
0x16cd   :  { %v1418_v36 = vpop.xlane.xlu1 %1417  ;;  %v1497_v61 = vrot.slane %v1421_v35, %v1477_v55 }
0x16ce   :  { %v1493_v63 = vrot.slane %v1418_v36, %v1472_v56 }
0x16d0   :  { %v1427_v38 = vpop.xlane.xlu0 %1426  ;;  %v1498_v15 = vsel %vm1479_vm2, %v1497_v61, %v1493_v63  ;;  %v2366_v63 = vmov 0  }
0x16d1   :  { %v1424_v39 = vpop.xlane.xlu1 %1423  ;;  %v1506_v5 = vrot.slane %v1427_v38, %v1477_v55  ;;  %2123 = vset.pattern.permute.xlu0 %v2366_v63 }
0x16d2   :  { %v1502_v6 = vrot.slane %v1424_v39, %v1472_v56 }
0x16d4   :  { %v1433_v4 = vpop.xlane.xlu0 %1432  ;;  %v1507_v18 = vsel %vm1479_vm2, %v1506_v5, %v1502_v6 }
0x16d5   :  { %v1430_v9 = vpop.xlane.xlu1 %1429  ;;  %v1515_v7 = vrot.slane %v1433_v4, %v1477_v55 }
0x16d6   :  { %v1511_v10 = vrot.slane %v1430_v9, %v1472_v56 }
0x16d8   :  { %v1439_v48 = vpop.xlane.xlu0 %1438  ;;  %v1516_v23 = vsel %vm1479_vm2, %v1515_v7, %v1511_v10  ;;  %v2369_v7 = vmov 1   ;;  %v2370_v10 = vmov 6  }
0x16d9   :  { %v1436_v53 = vpop.xlane.xlu1 %1435  ;;  %v1524_v11 = vrot.slane %v1439_v48, %v1477_v55 }
0x16da   :  { %v1520_v49 = vrot.slane %v1436_v53, %v1472_v56 }
0x16dc   :  { %v1406_v57 = vpop.xlane.xlu0 %1405  ;;  %v1525_v52 = vsel %vm1479_vm2, %v1524_v11, %v1520_v49  ;;  %v2371_v11 = vmov 2  }
0x16dd   :  { %v1473_v58 = vrot.slane %v1406_v57, %v1472_v56  ;;  %v1442_v1 = vpop.xlane.xlu1 %1441 }
0x16de   :  { %v1529_v24 = vrot.slane %v1442_v1, %v1472_v56  ;;  %v2367_v1 = vmov 3  }
0x16df   :  { %v1480_v13 = vsel %vm1479_vm2, %v1478_v59, %v1473_v58 }
0x16e0   :  { %v1412_v2 = vpop.xlane.xlu0 %1411 }
0x16e1   :  { %v1484_v51 = vrot.slane %v1412_v2, %v1472_v56  ;;  %v1448_v25 = vpop.xlane.xlu1 %1447 }
0x16e2   :  { %v1538_v34 = vrot.slane %v1448_v25, %v1472_v56 }
0x16e3   :  { %v1489_v14 = vsel %vm1479_vm2, %v1488_v3, %v1484_v51  ;;  %v2368_v51 = vmov 4  }
0x16e4   :  { %v1545_v16 = vsel %vm1544_vm3, %v1489_v14, %v1480_v13  ;;  %v1445_v17 = vpop.xlane.xlu0 %1444  ;;  %v2372_v14 = vmov 5  }
0x16e5   :  { %v1547_v19 = vsel %vm1546_vm4, %v1498_v15, %v1545_v16  ;;  %v1533_v21 = vrot.slane %v1445_v17, %v1477_v55  ;;  %v2373_v15 = vmov 7   ;;  %v2148_v16 = vld [vmem:[%s2807_s4] sm:$0xff]   ;;  %v2149_v17 = vld [vmem:[%s2807_s4 + $0x8] sm:$0xff]  }
0x16e6   :  { %v1549_v26 = vsel %vm1548_vm5, %v1507_v18, %v1547_v19  ;;  %2034 = vmatpush3.bf16.msra.mxu0 %v2148_v16 }
0x16e7   :  { %v1551_v27 = vsel %vm1550_vm6, %v1516_v23, %v1549_v26  ;;  %v1534_v32 = vsel %vm1479_vm2, %v1533_v21, %v1529_v24  ;;  %2035 = vmatprep.subr.bf16.mxu0 %v2364_v0 }
0x16e8   :  { %v1451_v50 = vpop.xlane.xlu0 %1450  ;;  %v1553_v33 = vsel %vm1552_vm7, %v1525_v52, %v1551_v27 }
0x16e9   :  { %v1542_v35 = vrot.slane %v1451_v50, %v1477_v55  ;;  %v1555_v37 = vsel %vm1554_vm8, %v1534_v32, %v1553_v33 }
0x16ea   :  { %2036 = vmatpush3.bf16.msra.mxu0 %v2149_v17 }
0x16eb   :  { %v1543_v36 = vsel %vm1479_vm2, %v1542_v35, %v1538_v34 }
0x16ec   :  { %v1557_v38 = vsel %vm1556_vm9, %v1543_v36, %v1555_v37 }
0x16ed   :  { %1559 = vxpose.xlu1.b32.start.end [1/1] (short) (narrow) %v1557_v38, 16 }
0x170b   :  { %2126 = vset.pattern.permute.xlu1 %v2367_v1 }
0x176d   :  { %v1575_v39 = vpop.trf.xlu1 }
0x176e   :  { %v1592_v41 = vsel %vm1591_vm10, %v1575_v39, -inf }
0x176f   :  { %1593 = vmax.xlane.f32.xlu0 %v1592_v41 }
0x1771   :  { %v1576_v4 = vpop.trf.xlu1 }
0x1772   :  { %v1595_v9 = vsel %vm1591_vm10, %v1576_v4, -inf }
0x1773   :  { %1596 = vmax.xlane.f32.xlu0 %v1595_v9 }
0x17fc   :  { %v1594_v45 = vpop.xlane.xlu0 %1593 }
0x17fd   :  { %v1598_v47 = vsub.f32 %v1575_v39, %v1594_v45 }
0x17ff   :  { %v1600_v48 = vmul.f32 1.442695, %v1598_v47 }
0x1800   :  { %v1597_v53 = vpop.xlane.xlu0 %1596 }
0x1801   :  { %2278 = vpow2.f32 %v1600_v48  ;;  %v1599_v55 = vsub.f32 %v1576_v4, %v1597_v53 }
0x1803   :  { %v1602_v56 = vmul.f32 1.442695, %v1599_v55 }
0x1805   :  { %2280 = vpow2.f32 %v1602_v56 }
0x180b   :  { %v2279_v57 = vpop.eup %2278 }
0x180c   :  { %v1604_v58 = vsel %vm1591_vm10, %v2279_v57, 0.0 }
0x180d   :  { %1605 = vadd.xlane.f32.xlu0 %v1604_v58 }
0x180f   :  { %v2281_v59 = vpop.eup %2280 }
0x1810   :  { %v1607_v61 = vsel %vm1591_vm10, %v2281_v59, 0.0 }
0x1811   :  { %1608 = vadd.xlane.f32.xlu0 %v1607_v61 }
0x189a   :  { %v1606_v2 = vpop.xlane.xlu0 %1605 }
0x189b   :  { %2282 = vrcp.f32 %v1606_v2 }
0x189e   :  { %v1609_v5 = vpop.xlane.xlu0 %1608 }
0x189f   :  { %2284 = vrcp.f32 %v1609_v5 }
0x18a5   :  { %v2283_v3 = vpop.eup %2282 }
0x18a6   :  { %v1611_v6 = vmul.f32 %v2283_v3, %v2279_v57 }
0x18a8   :  { %1653 = vperm.xlu1 %2126, %v1611_v6   ;;  %1616 = vperm.xlu0 %2123, %v1611_v6  }
0x18a9   :  { %v2285_v49 = vpop.eup %2284 }
0x18aa   :  { %v2746_v13 = vmul.f32 %v2285_v49, %v2281_v59 }
0x18ac   :  { %2127 = vset.pattern.permute.xlu1 %v2368_v51  ;;  %2124 = vset.pattern.permute.xlu0 %v2369_v7 }
0x18ad   :  { %1665 = vperm.xlu1 %2127, %v1611_v6   ;;  %1629 = vperm.xlu0 %2124, %v1611_v6  }
0x18b1   :  { %2129 = vset.pattern.permute.xlu1 %v2370_v10  ;;  %2125 = vset.pattern.permute.xlu0 %v2371_v11 }
0x18b2   :  { %1689 = vperm.xlu1 %2129, %v1611_v6   ;;  %1641 = vperm.xlu0 %2125, %v1611_v6  }
0x18b6   :  { %2130 = vset.pattern.permute.xlu1 %v2366_v63  ;;  %2128 = vset.pattern.permute.xlu0 %v2372_v14 }
0x18b7   :  { %1677 = vperm.xlu0 %2128, %v1611_v6   ;;  %1621 = vperm.xlu1 %2130, %v2746_v13  }
0x18bb   :  { %2131 = vset.pattern.permute.xlu0 %v2369_v7  ;;  %2134 = vset.pattern.permute.xlu1 %v2368_v51 }
0x18bc   :  { %1633 = vperm.xlu0 %2131, %v2746_v13   ;;  %1669 = vperm.xlu1 %2134, %v2746_v13  }
0x18c0   :  { %2132 = vset.pattern.permute.xlu0 %v2371_v11  ;;  %2135 = vset.pattern.permute.xlu1 %v2372_v14 }
0x18c1   :  { %1645 = vperm.xlu0 %2132, %v2746_v13   ;;  %1681 = vperm.xlu1 %2135, %v2746_v13  }
0x18c5   :  { %2133 = vset.pattern.permute.xlu0 %v2367_v1  ;;  %2137 = vset.pattern.permute.xlu1 %v2373_v15 }
0x18c6   :  { %1657 = vperm.xlu0 %2133, %v2746_v13   ;;  %1701 = vperm.xlu1 %2137, %v1611_v6  }
0x18ca   :  { %2136 = vset.pattern.permute.xlu0 %v2370_v10  ;;  %1705 = vperm.xlu1 %2137, %v2746_v13  }
0x18cb   :  { %1693 = vperm.xlu0 %2136, %v2746_v13  }
0x18ce   :  { %1783 = vrot.lane.b32.xlu1 %v1611_v6, %s2360_s8 }
0x18cf   :  { %2138 = vset.pattern.permute.xlu0 %v2373_v15 }
0x1927   :  { %v1654_v18 = vpop.permute.xlu1 %1653  ;;  %v1617_v19 = vpop.permute.xlu0 %1616 }
0x1928   :  { %v1624_v50 = vmul.f32 %v1617_v19, %v2481_v44  ;;  %v1660_v0 = vmul.f32 %v1654_v18, %v2568_v42 }
0x192c   :  { %v1666_v21 = vpop.permute.xlu1 %1665  ;;  %v1630_v23 = vpop.permute.xlu0 %1629 }
0x192d   :  { %v1636_v27 = vmul.f32 %v1630_v23, %v2508_v22  ;;  %v1672_v22 = vmul.f32 %v1666_v21, %v2604_v31 }
0x192f   :  { %v1638_v35 = vadd.f32 %v1636_v27, %v1624_v50 }
0x1931   :  { %v1690_v24 = vpop.permute.xlu1 %1689  ;;  %v1642_v25 = vpop.permute.xlu0 %1641 }
0x1932   :  { %v1648_v32 = vmul.f32 %v1642_v25, %v2534_v62  ;;  %v1696_v59 = vmul.f32 %v1690_v24, %v2647_v54 }
0x1934   :  { %v1650_v36 = vadd.f32 %v1648_v32, %v1638_v35 }
0x1936   :  { %v1622_v26 = vpop.permute.xlu1 %1621  ;;  %v1678_v52 = vpop.permute.xlu0 %1677  ;;  %v1662_v41 = vadd.f32 %v1660_v0, %v1650_v36 }
0x1937   :  { %v1625_v4 = vmul.f32 %v1622_v26, %v2485_v46  ;;  %v1684_v48 = vmul.f32 %v1678_v52, %v2627_v12 }
0x1938   :  { %v1674_v47 = vadd.f32 %v1672_v22, %v1662_v41 }
0x193a   :  { %v1686_v56 = vadd.f32 %v1684_v48, %v1674_v47 }
0x193b   :  { %v1670_v33 = vpop.permute.xlu1 %1669  ;;  %v1634_v34 = vpop.permute.xlu0 %1633 }
0x193c   :  { %v1637_v37 = vmul.f32 %v1634_v34, %v2506_v20  ;;  %v1673_v20 = vmul.f32 %v1670_v33, %v2602_v28  ;;  %v1698_v12 = vadd.f32 %v1696_v59, %v1686_v56 }
0x193e   :  { %v1639_v44 = vadd.f32 %v1637_v37, %v1625_v4 }
0x1940   :  { %v1682_v38 = vpop.permute.xlu1 %1681  ;;  %v1646_v39 = vpop.permute.xlu0 %1645 }
0x1941   :  { %v1649_v9 = vmul.f32 %v1646_v39, %v2532_v60  ;;  %v1685_v57 = vmul.f32 %v1682_v38, %v2625_v8 }
0x1943   :  { %v1651_v53 = vadd.f32 %v1649_v9, %v1639_v44 }
0x1945   :  { %v1702_v45 = vpop.permute.xlu1 %1701  ;;  %v1658_v62 = vpop.permute.xlu0 %1657 }
0x1946   :  { %v1661_v42 = vmul.f32 %v1658_v62, %v2566_v40  ;;  %v1708_v61 = vmul.f32 %v1702_v45, %v2667_v30 }
0x1948   :  { %v1663_v55 = vadd.f32 %v1661_v42, %v1651_v53  ;;  %v1710_v2 = vadd.f32 %v1708_v61, %v1698_v12 }
0x1949   :  { %v1706_v60 = vpop.permute.xlu1 %1705 }
0x194a   :  { %v1675_v46 = vadd.f32 %v1673_v20, %v1663_v55  ;;  %v1694_v58 = vpop.permute.xlu0 %1693  ;;  %v1709_v1 = vmul.f32 %v1706_v60, %v2665_v29 }
0x194b   :  { %v1697_v31 = vmul.f32 %v1694_v58, %v2645_v43  ;;  %v1863_v43 = vld [vmem:[%s2808_s5] ss:$0 sm:$0xff]  ;;  %s2330_s5 = scalar_lea.vmem %s1803_s9, 256 }
0x194c   :  { %v1687_v63 = vadd.f32 %v1685_v57, %v1675_v46  ;;  %p2331_p2 = scmp.ne.s32.totalorder %s1803_s9, %s2330_s5  ;;  %p2336_p4 = scmp.lt.s32.totalorder %s2330_s5, %s2330_s5 }
0x194d   :  { %v1784_v5 = vpop.permute.xlu1 %1783 }
0x194e   :  { %v1699_v40 = vadd.f32 %v1697_v31, %v1687_v63  ;;  %p2337_p5 = por %p2336_p4, %p2335_p3 }
0x1950   :  { %v1711_v28 = vadd.f32 %v1709_v1, %v1699_v40  ;;  %p2338_p6 = pnand %p2337_p5, %p2331_p2 }
0x1952   :  { %v1712_v3 = vpack.c.bf16 %v1711_v28, %v1710_v2 }
0x1954   :  { %1725 = vrot.lane.b32.xlu0 %v1712_v3, %s2365_s3 }
0x1958   :  { %1785 = vrot.lane.b32.xlu0 %v2746_v13, %s2360_s8 }
0x19c6   :  { %v1726_v8 = vpop.permute.xlu0 %1725 }
0x19c7   :  { %2038 = vmatmul.mubr.msk.bf16.vlgmr.msra.gmra.mrb[20].mxu0 %vm250_vm1, %v1726_v8 }
0x19ca   :  { %v1786_v11 = vpop.permute.xlu0 %1785 }
0x1a9a   :  { %v1776_v54 = vpop.f32.mrb[20].mxu0 }
0x1a9b   :  { %v1777_v30 = vadd.f32 %v1863_v43, %v1776_v54  ;;  %v2039_v29 = vpop.f32.mrb[21].mxu0 }
0x1a9c   :  { %v1779_v6 = vpop.f32.mrb[22].mxu0 }
0x1a9d   :  { %v1790_v51 = vsel %vm1789_vm12, %v1777_v30, %v1784_v5  ;;  %v1780_v7 = vadd.f32 %v1863_v43, %v1779_v6  ;;  %v2040_v10 = vpop.f32.mrb[23].mxu0 }
0x1a9e   :  { %v1793_v49 = vsel %vm1792_vm13, %v1790_v51, 0.0 }
0x1a9f   :  { %v1791_v13 = vsel %vm1789_vm12, %v1780_v7, %v1786_v11  ;;  %1795 = vst [vmem:[#allocation7] sm:$0xff] %v1793_v49 }
0x1aa0   :  { %v1794_v14 = vsel %vm1792_vm13, %v1791_v13, 0.0 }
0x1aa1   :  { %1796 = vst [vmem:[#allocation7 + $0x8] sm:$0xff] %v1794_v14 }
0x1aa2   :  { %2341 = shalt.err (!%p2338_p6)
}
0x1aa3   :  { %s2342_s11 = scalar_lea.hbm %s2809_s6, 256 }
0x1aa4   :  { %p2343_p7 = scmp.ne.s32.totalorder %s2809_s6, %s2342_s11  ;;  %p2346_p8 = scmp.lt.u32.totalorder %s2342_s11, %s2809_s6 }
0x1aa6   :  { %p2348_p9 = pnand %p2346_p8, %p2343_p7 }
0x1aa8   :  { %2351 = shalt.err (!%p2348_p9)
}
0x1aa9   :  { %1808 = dma.vmem_to_hbm [thread:$0]  %s1803_s9, 256, %s2809_s6, [#allocation4], %s2362_s0, %s2362_s0, %s2363_s21  }
0x1aaa   :  { %2356 = dma.done.wait [#allocation4], 256  }
0x1aab   :  { %2357 = vsyncadd [#allocation4], 4294967040 }
0x1aac   :  { %1812 = vsyncpa [#allocation3], 1 }
0x1aad   :  { %1813 = vsyncpa [#allocation6], 1 }
0x1aae   :  { %1814 = vsyncpa [#allocation4], 1 }

</bundles_post_ra>
